<compile_context>
chip_gen: v6e
topology: v6e:2x2x1
jax: 0.10.0
libtpu: 0.0.40
codegen_flags: <defaults>
</compile_context>

<pallas_src>
import functools

import jax
import jax.numpy as jnp
from jax import lax
from jax.experimental import pallas as pl
from jax.experimental.pallas import tpu as pltpu

LANE = 128
BF16_SUBLANE = 16


def _round_up(n, m):
    return ((n + m - 1) // m) * m


def _pad2d(x, shape):
    return jnp.pad(x, [(0, s - d) for d, s in zip(x.shape, shape)])


def _sage2_kernel(a1_ref, invd1_ref, x_ref, a2_ref, invd2_ref,
                  w1l_ref, w1r_ref, b1_ref, w2l_ref, w2r_ref, b2_ref,
                  o_ref, h1_ref, *, tm, n1, n2p):
    """Grid step i: layer-1 for target rows [i*tm, i*tm+tm); layer 2 fused into
    the last step (pl.when) reading the resident h1 VMEM scratch."""
    f32 = jnp.float32
    bf = h1_ref.dtype
    i = pl.program_id(0)
    row0 = pl.multiple_of(i * tm, tm)

    # ---------------- layer 1 (this tile of targets) ----------------
    # mean aggregation = (integer-count adjacency @ x) * 1/deg; the f32 scale
    # is applied AFTER the matmul so the bf16 adjacency stays exact.
    agg1 = jnp.dot(a1_ref[...], x_ref[...], preferred_element_type=f32)
    agg1 = agg1 * invd1_ref[...]
    # x_dst: targets are the first n1 rows of x (PyG NeighborSampler layout).
    x_dst = x_ref[pl.ds(row0, tm), :]
    h1 = (jnp.dot(agg1.astype(bf), w1l_ref[...], preferred_element_type=f32)
          + jnp.dot(x_dst, w1r_ref[...], preferred_element_type=f32)
          + b1_ref[...])
    # F.normalize(p=2, dim=-1): clamp_min(norm, 1e-12) == clamp sumsq at 1e-24
    inv_n1 = lax.rsqrt(jnp.maximum(jnp.sum(h1 * h1, -1, keepdims=True), 1e-24))
    h1 = jnp.maximum(h1 * inv_n1, 0.0)              # relu (not the last layer)
    # zero out padded target rows (>= n1) so layer 2 never sees garbage
    rows = row0 + lax.broadcasted_iota(jnp.int32, (tm, 1), 0)
    h1 = jnp.where(rows < n1, h1, 0.0)
    h1_ref[pl.ds(row0, tm), :] = h1.astype(bf)

    # ---------------- layer 2 (once all of h1 is resident) ----------------
    @pl.when(i == pl.num_programs(0) - 1)
    def _():
        agg2 = jnp.dot(a2_ref[...], h1_ref[...], preferred_element_type=f32)
        agg2 = agg2 * invd2_ref[...]
        h1_dst = h1_ref[:n2p, :]
        h2 = (jnp.dot(agg2.astype(bf), w2l_ref[...], preferred_element_type=f32)
              + jnp.dot(h1_dst, w2r_ref[...], preferred_element_type=f32)
              + b2_ref[...])
        inv_n2 = lax.rsqrt(
            jnp.maximum(jnp.sum(h2 * h2, -1, keepdims=True), 1e-24))
        o_ref[...] = (h2 * inv_n2).astype(o_ref.dtype)   # no relu (last layer)


def sage2_forward(x, adj1, adj2, params, *, tm=128):
    """Fused two-layer SAGE forward.

    adj = (counts [n_tgt, n_src] (integer-valued f32), inv_deg [n_tgt, 1] f32,
           (n_src, n_tgt)).  params = ((W_l1, b_l1, W_r1), (W_l2, b_l2, W_r2)),
    weights stored [c_in, c_out].
    """
    c1, invd1, (n0, n1) = adj1
    c2, invd2, (n1b, n2) = adj2
    assert n1b == n1 and n2 <= n1 <= n0, \
        "PyG sampler layout requires targets to be a prefix of sources"
    c_in = x.shape[1]
    (w_l1, b_l1, w_r1), (w_l2, b_l2, w_r2) = params
    c_hid = w_l1.shape[1]

    # padded / tiled dims (sized for the smallest-VMEM chip first: v7x 64 MiB)
    n1p = _round_up(n1, tm)                    # layer-1 target rows (grid axis)
    n0p = max(_round_up(n0, LANE), n1p)        # sources (reduction of A1 @ x)
    n2p = _round_up(n2, BF16_SUBLANE)          # layer-2 target rows
    chp = _round_up(c_hid, LANE)               # hidden, lane-dense output
    bf = jnp.bfloat16
    f32 = jnp.float32

    # NOTE: x keeps its native (small) channel width — no 128-lane pad in HBM.
    xp = _pad2d(x, (n0p, c_in)).astype(bf)
    a1p = _pad2d(c1, (n1p, n0p)).astype(bf)    # small integer counts: exact bf16
    a2p = _pad2d(c2, (n2p, n1p)).astype(bf)
    invd1p = _pad2d(invd1, (n1p, 1)).astype(f32)
    invd2p = _pad2d(invd2, (n2p, 1)).astype(f32)
    w1l = _pad2d(w_l1, (c_in, chp)).astype(bf)
    w1r = _pad2d(w_r1, (c_in, chp)).astype(bf)
    b1 = _pad2d(b_l1.reshape(1, -1), (1, chp)).astype(f32)
    w2l = _pad2d(w_l2, (chp, chp)).astype(bf)
    w2r = _pad2d(w_r2, (chp, chp)).astype(bf)
    b2 = _pad2d(b_l2.reshape(1, -1), (1, chp)).astype(f32)

    const = lambda i: (0, 0)
    kernel = functools.partial(_sage2_kernel, tm=tm, n1=n1, n2p=n2p)
    out = pl.pallas_call(
        kernel,
        out_shape=jax.ShapeDtypeStruct((n2p, chp), jnp.float32),
        grid_spec=pltpu.PrefetchScalarGridSpec(
            num_scalar_prefetch=0,
            grid=(n1p // tm,),
            in_specs=[
                pl.BlockSpec((tm, n0p), lambda i: (i, 0)),   # A1 counts tile
                pl.BlockSpec((tm, 1), lambda i: (i, 0)),     # 1/deg1 tile
                pl.BlockSpec((n0p, c_in), const),            # x (resident)
                pl.BlockSpec((n2p, n1p), const),             # A2 counts
                pl.BlockSpec((n2p, 1), const),                # 1/deg2
                pl.BlockSpec((c_in, chp), const),             # W_l1
                pl.BlockSpec((c_in, chp), const),             # W_r1
                pl.BlockSpec((1, chp), const),                # b1
                pl.BlockSpec((chp, chp), const),              # W_l2
                pl.BlockSpec((chp, chp), const),              # W_r2
                pl.BlockSpec((1, chp), const),                # b2
            ],
            out_specs=pl.BlockSpec((n2p, chp), const),
            scratch_shapes=[pltpu.VMEM((n1p, chp), bf)],      # resident h1
        ),
        compiler_params=pltpu.CompilerParams(
            # layer 2 reads the whole h1 scratch in the final step, so the
            # grid axis must stay sequential within this call.
            dimension_semantics=("arbitrary",),
            vmem_limit_bytes=32 * 1024 * 1024,
        ),
    )(a1p, invd1p, xp, a2p, invd2p, w1l, w1r, b1, w2l, w2r, b2)
    return out[:n2, :c_hid]


def build_mean_adj(edge_index, n_src, n_tgt):
    """Dense integer edge-count matrix + per-target 1/deg (f32).
    TODO(synk): replace with a sparse scalar-prefetch/DMA-gather segment-mean
    for production graph sizes."""
    src, dst = edge_index
    counts = jnp.zeros((n_tgt, n_src), jnp.float32).at[dst, src].add(1.0)
    deg = jnp.sum(counts, axis=1, keepdims=True)
    inv_deg = jnp.where(deg > 0.0, 1.0 / deg, 0.0)
    return counts, inv_deg


def sage2_reference(x, adj1, adj2, params):
    """Pure-JAX f32 reference (same math as PyG SAGEConv(normalize=True) x2)."""
    c1, invd1, (_, n1) = adj1
    c2, invd2, (_, n2) = adj2
    (w_l1, b_l1, w_r1), (w_l2, b_l2, w_r2) = params

    def normalize(h):
        return h / jnp.maximum(
            jnp.sqrt(jnp.sum(h * h, -1, keepdims=True)), 1e-12)

    h = ((c1 @ x) * invd1) @ w_l1 + x[:n1] @ w_r1 + b_l1
    h = jnp.maximum(normalize(h), 0.0)
    out = ((c2 @ h) * invd2) @ w_l2 + h[:n2] @ w_r2 + b_l2
    return normalize(out)


class SAGEPallas:
    """Pallas equivalent of the 2-layer SAGE module (SAGEConv, normalize=True)."""

    def __init__(self, in_channels, hidden_channels, key):
        self.num_layers = 2
        self.params = []
        for cin, cout in ((in_channels, hidden_channels),
                          (hidden_channels, hidden_channels)):
            k1, k2, k3, key = jax.random.split(key, 4)
            bound = 1.0 / float(cin) ** 0.5
            # lin_l: Linear(cin, cout, bias=True); lin_r: Linear(cin, cout, bias=False)
            w_l = jax.random.uniform(k1, (cin, cout), jnp.float32, -bound, bound)
            b_l = jax.random.uniform(k2, (cout,), jnp.float32, -bound, bound)
            w_r = jax.random.uniform(k3, (cin, cout), jnp.float32, -bound, bound)
            self.params.append((w_l, b_l, w_r))

    def __call__(self, x, adjs):
        # adjs: [(edge_index, (n_src, n_tgt)), ...], targets = first rows of x.
        (e1, size1), (e2, size2) = adjs
        c1, invd1 = build_mean_adj(e1, size1[0], size1[1])
        c2, invd2 = build_mean_adj(e2, size2[0], size2[1])
        return sage2_forward(x, (c1, invd1, size1), (c2, invd2, size2),
                             self.params)


if __name__ == "__main__":
    key = jax.random.PRNGKey(0)
    in_channels, hidden_channels = 16, 32
    # sampled-subgraph node counts per hop (targets are a prefix of sources);
    # n1=160 -> n1p=256 -> 2 grid steps at tm=128, exercising tiling + masking.
    n0, n1, n2 = 300, 160, 64

    k_x, k_e1, k_e2, k_p = jax.random.split(key, 4)
    x = jax.random.normal(k_x, (n0, in_channels), jnp.float32)

    def rand_edges(k, n_edges, n_src, n_tgt):
        ks, kd = jax.random.split(k)
        return jnp.stack([jax.random.randint(ks, (n_edges,), 0, n_src),
                          jax.random.randint(kd, (n_edges,), 0, n_tgt)])

    e1 = rand_edges(k_e1, 1600, n0, n1)   # layer-1 bipartite edges
    e2 = rand_edges(k_e2, 640, n1, n2)    # layer-2 bipartite edges
    adjs = [(e1, (n0, n1)), (e2, (n1, n2))]

    model = SAGEPallas(in_channels, hidden_channels, k_p)
    out = jax.block_until_ready(model(x, adjs))

    assert out.shape == (n2, hidden_channels)
    assert out.dtype == jnp.float32
    assert bool(jnp.all(jnp.isfinite(out)))

    # pure-JAX f32 reference; loose tolerance for the bf16 MXU inputs
    c1, invd1 = build_mean_adj(e1, n0, n1)
    c2, invd2 = build_mean_adj(e2, n1, n2)
    ref = sage2_reference(x, (c1, invd1, (n0, n1)), (c2, invd2, (n1, n2)),
                          model.params)
    assert float(jnp.max(jnp.abs(out - ref))) < 5e-2
    print("KERNEL_OK")
</pallas_src>

<mosaic_0001>
module attributes {stable_mosaic.version = 11 : i64} {
  func.func @_sage2_kernel(%arg0: i32, %arg1: memref<128x384xbf16, #tpu.memory_space<vmem>>, %arg2: memref<128x1xf32, #tpu.memory_space<vmem>>, %arg3: memref<384x16xbf16, #tpu.memory_space<vmem>>, %arg4: memref<64x256xbf16, #tpu.memory_space<vmem>>, %arg5: memref<64x1xf32, #tpu.memory_space<vmem>>, %arg6: memref<16x128xbf16, #tpu.memory_space<vmem>>, %arg7: memref<16x128xbf16, #tpu.memory_space<vmem>>, %arg8: memref<1x128xf32, #tpu.memory_space<vmem>>, %arg9: memref<128x128xbf16, #tpu.memory_space<vmem>>, %arg10: memref<128x128xbf16, #tpu.memory_space<vmem>>, %arg11: memref<1x128xf32, #tpu.memory_space<vmem>>, %arg12: memref<64x128xf32, #tpu.memory_space<vmem>>, %arg13: memref<256x128xbf16, #tpu.memory_space<vmem>>) attributes {dimension_semantics = [#tpu.dimension_semantics<arbitrary>], iteration_bounds = array<i64: 2>, scalar_prefetch = 0 : i64, scratch_operands = 1 : i64, tpu.core_type = #tpu.core_type<tc>, window_params = [{transform_indices = @transform_0, window_bounds = array<i64: 128, 384>}, {transform_indices = @transform_1, window_bounds = array<i64: 128, 1>}, {pipeline_mode = #tpu.pipeline_mode<synchronous>, transform_indices = @transform_2, window_bounds = array<i64: 384, 16>}, {pipeline_mode = #tpu.pipeline_mode<synchronous>, transform_indices = @transform_3, window_bounds = array<i64: 64, 256>}, {pipeline_mode = #tpu.pipeline_mode<synchronous>, transform_indices = @transform_4, window_bounds = array<i64: 64, 1>}, {pipeline_mode = #tpu.pipeline_mode<synchronous>, transform_indices = @transform_5, window_bounds = array<i64: 16, 128>}, {pipeline_mode = #tpu.pipeline_mode<synchronous>, transform_indices = @transform_6, window_bounds = array<i64: 16, 128>}, {pipeline_mode = #tpu.pipeline_mode<synchronous>, transform_indices = @transform_7, window_bounds = array<i64: 1, 128>}, {pipeline_mode = #tpu.pipeline_mode<synchronous>, transform_indices = @transform_8, window_bounds = array<i64: 128, 128>}, {pipeline_mode = #tpu.pipeline_mode<synchronous>, transform_indices = @transform_9, window_bounds = array<i64: 128, 128>}, {pipeline_mode = #tpu.pipeline_mode<synchronous>, transform_indices = @transform_10, window_bounds = array<i64: 1, 128>}, {pipeline_mode = #tpu.pipeline_mode<synchronous>, transform_indices = @transform_11, window_bounds = array<i64: 64, 128>}]} {
    %c128_i32 = arith.constant 128 : i32
    %0 = arith.muli %arg0, %c128_i32 : i32
    %1 = tpu.assume_multiple %0, 128 : i32
    %c0 = arith.constant 0 : index
    %c0_0 = arith.constant 0 : index
    %2 = vector.load %arg1[%c0, %c0_0] : memref<128x384xbf16, #tpu.memory_space<vmem>>, vector<128x384xbf16>
    %c0_1 = arith.constant 0 : index
    %c0_2 = arith.constant 0 : index
    %3 = vector.load %arg3[%c0_1, %c0_2] : memref<384x16xbf16, #tpu.memory_space<vmem>>, vector<384x16xbf16>
    %cst = arith.constant dense<0.000000e+00> : vector<128x16xf32>
    %4 = tpu.matmul %2, %3, %cst {dimension_numbers = #tpu.dot_dimension_numbers<[1], [0], [0], [1], [0, 0, 1, 1], [], []>} : vector<128x384xbf16>, vector<384x16xbf16>, vector<128x16xf32> -> vector<128x16xf32>
    %c0_3 = arith.constant 0 : index
    %c0_4 = arith.constant 0 : index
    %5 = vector.load %arg2[%c0_3, %c0_4] : memref<128x1xf32, #tpu.memory_space<vmem>>, vector<128x1xf32>
    %6 = vector.broadcast %5 : vector<128x1xf32> to vector<128x16xf32>
    %7 = arith.mulf %4, %6 : vector<128x16xf32>
    %8 = arith.index_cast %1 : i32 to index
    %c0_5 = arith.constant 0 : index
    %9 = vector.load %arg3[%8, %c0_5] : memref<384x16xbf16, #tpu.memory_space<vmem>>, vector<128x16xbf16>
    %10 = arith.truncf %7 : vector<128x16xf32> to vector<128x16xbf16>
    %c0_6 = arith.constant 0 : index
    %c0_7 = arith.constant 0 : index
    %11 = vector.load %arg6[%c0_6, %c0_7] : memref<16x128xbf16, #tpu.memory_space<vmem>>, vector<16x128xbf16>
    %cst_8 = arith.constant dense<0.000000e+00> : vector<128x128xf32>
    %12 = tpu.matmul %10, %11, %cst_8 {dimension_numbers = #tpu.dot_dimension_numbers<[1], [0], [0], [1], [0, 0, 1, 1], [], []>} : vector<128x16xbf16>, vector<16x128xbf16>, vector<128x128xf32> -> vector<128x128xf32>
    %c0_9 = arith.constant 0 : index
    %c0_10 = arith.constant 0 : index
    %13 = vector.load %arg7[%c0_9, %c0_10] : memref<16x128xbf16, #tpu.memory_space<vmem>>, vector<16x128xbf16>
    %cst_11 = arith.constant dense<0.000000e+00> : vector<128x128xf32>
    %14 = tpu.matmul %9, %13, %cst_11 {dimension_numbers = #tpu.dot_dimension_numbers<[1], [0], [0], [1], [0, 0, 1, 1], [], []>} : vector<128x16xbf16>, vector<16x128xbf16>, vector<128x128xf32> -> vector<128x128xf32>
    %15 = arith.addf %12, %14 : vector<128x128xf32>
    %c0_12 = arith.constant 0 : index
    %c0_13 = arith.constant 0 : index
    %16 = vector.load %arg8[%c0_12, %c0_13] : memref<1x128xf32, #tpu.memory_space<vmem>>, vector<1x128xf32>
    %17 = vector.broadcast %16 : vector<1x128xf32> to vector<128x128xf32>
    %18 = arith.addf %15, %17 : vector<128x128xf32>
    %19 = arith.mulf %18, %18 : vector<128x128xf32>
    %cst_14 = arith.constant dense<0.000000e+00> : vector<128xf32>
    %20 = vector.multi_reduction <add>, %19, %cst_14 [1] : vector<128x128xf32> to vector<128xf32>
    %21 = vector.shape_cast %20 : vector<128xf32> to vector<128x1xf32>
    %cst_15 = arith.constant 1.000000e-24 : f32
    %22 = vector.broadcast %cst_15 : f32 to vector<128x1xf32>
    %23 = arith.maximumf %21, %22 : vector<128x1xf32>
    %24 = math.rsqrt %23 : vector<128x1xf32>
    %25 = vector.broadcast %24 : vector<128x1xf32> to vector<128x128xf32>
    %26 = arith.mulf %18, %25 : vector<128x128xf32>
    %cst_16 = arith.constant 0.000000e+00 : f32
    %27 = vector.broadcast %cst_16 : f32 to vector<128x128xf32>
    %28 = arith.maximumf %26, %27 : vector<128x128xf32>
    %29 = tpu.iota {dimensions = array<i32: 0>} : vector<128x1xi32>
    %30 = vector.broadcast %1 : i32 to vector<128x1xi32>
    %31 = arith.addi %30, %29 : vector<128x1xi32>
    %c160_i32 = arith.constant 160 : i32
    %32 = vector.broadcast %c160_i32 : i32 to vector<128x1xi32>
    %33 = arith.cmpi slt, %31, %32 : vector<128x1xi32>
    %cst_17 = arith.constant 0.000000e+00 : f32
    %34 = vector.shape_cast %33 : vector<128x1xi1> to vector<128x1xi1>
    %35 = vector.broadcast %34 : vector<128x1xi1> to vector<128x128xi1>
    %36 = vector.broadcast %cst_17 : f32 to vector<128x128xf32>
    %37 = arith.select %35, %28, %36 : vector<128x128xi1>, vector<128x128xf32>
    %38 = arith.truncf %37 : vector<128x128xf32> to vector<128x128xbf16>
    %39 = arith.index_cast %1 : i32 to index
    %c0_18 = arith.constant 0 : index
    %40 = vector.load %arg13[%39, %c0_18] : memref<256x128xbf16, #tpu.memory_space<vmem>>, vector<128x128xbf16>
    tpu.vector_store %arg13[%39, %c0_18], %38 {strides = array<i32>} : memref<256x128xbf16, #tpu.memory_space<vmem>>, vector<128x128xbf16>,
    %c1_i32 = arith.constant 1 : i32
    %41 = arith.cmpi eq, %arg0, %c1_i32 : i32
    %42 = arith.extui %41 : i1 to i32
    %c0_i32 = arith.constant 0 : i32
    %43 = arith.cmpi ne, %42, %c0_i32 : i32
    scf.if %43 {
      %c0_19 = arith.constant 0 : index
      %c0_20 = arith.constant 0 : index
      %44 = vector.load %arg4[%c0_19, %c0_20] : memref<64x256xbf16, #tpu.memory_space<vmem>>, vector<64x256xbf16>
      %c0_21 = arith.constant 0 : index
      %c0_22 = arith.constant 0 : index
      %45 = vector.load %arg13[%c0_21, %c0_22] : memref<256x128xbf16, #tpu.memory_space<vmem>>, vector<256x128xbf16>
      %cst_23 = arith.constant dense<0.000000e+00> : vector<64x128xf32>
      %46 = tpu.matmul %44, %45, %cst_23 {dimension_numbers = #tpu.dot_dimension_numbers<[1], [0], [0], [1], [0, 0, 1, 1], [], []>} : vector<64x256xbf16>, vector<256x128xbf16>, vector<64x128xf32> -> vector<64x128xf32>
      %c0_24 = arith.constant 0 : index
      %c0_25 = arith.constant 0 : index
      %47 = vector.load %arg5[%c0_24, %c0_25] : memref<64x1xf32, #tpu.memory_space<vmem>>, vector<64x1xf32>
      %48 = vector.broadcast %47 : vector<64x1xf32> to vector<64x128xf32>
      %49 = arith.mulf %46, %48 : vector<64x128xf32>
      %c0_26 = arith.constant 0 : index
      %c0_27 = arith.constant 0 : index
      %50 = vector.load %arg13[%c0_26, %c0_27] : memref<256x128xbf16, #tpu.memory_space<vmem>>, vector<64x128xbf16>
      %51 = arith.truncf %49 : vector<64x128xf32> to vector<64x128xbf16>
      %c0_28 = arith.constant 0 : index
      %c0_29 = arith.constant 0 : index
      %52 = vector.load %arg9[%c0_28, %c0_29] : memref<128x128xbf16, #tpu.memory_space<vmem>>, vector<128x128xbf16>
      %cst_30 = arith.constant dense<0.000000e+00> : vector<64x128xf32>
      %53 = tpu.matmul %51, %52, %cst_30 {dimension_numbers = #tpu.dot_dimension_numbers<[1], [0], [0], [1], [0, 0, 1, 1], [], []>} : vector<64x128xbf16>, vector<128x128xbf16>, vector<64x128xf32> -> vector<64x128xf32>
      %c0_31 = arith.constant 0 : index
      %c0_32 = arith.constant 0 : index
      %54 = vector.load %arg10[%c0_31, %c0_32] : memref<128x128xbf16, #tpu.memory_space<vmem>>, vector<128x128xbf16>
      %cst_33 = arith.constant dense<0.000000e+00> : vector<64x128xf32>
      %55 = tpu.matmul %50, %54, %cst_33 {dimension_numbers = #tpu.dot_dimension_numbers<[1], [0], [0], [1], [0, 0, 1, 1], [], []>} : vector<64x128xbf16>, vector<128x128xbf16>, vector<64x128xf32> -> vector<64x128xf32>
      %56 = arith.addf %53, %55 : vector<64x128xf32>
      %c0_34 = arith.constant 0 : index
      %c0_35 = arith.constant 0 : index
      %57 = vector.load %arg11[%c0_34, %c0_35] : memref<1x128xf32, #tpu.memory_space<vmem>>, vector<1x128xf32>
      %58 = vector.broadcast %57 : vector<1x128xf32> to vector<64x128xf32>
      %59 = arith.addf %56, %58 : vector<64x128xf32>
      %60 = arith.mulf %59, %59 : vector<64x128xf32>
      %cst_36 = arith.constant dense<0.000000e+00> : vector<64xf32>
      %61 = vector.multi_reduction <add>, %60, %cst_36 [1] : vector<64x128xf32> to vector<64xf32>
      %62 = vector.shape_cast %61 : vector<64xf32> to vector<64x1xf32>
      %cst_37 = arith.constant 1.000000e-24 : f32
      %63 = vector.broadcast %cst_37 : f32 to vector<64x1xf32>
      %64 = arith.maximumf %62, %63 : vector<64x1xf32>
      %65 = math.rsqrt %64 : vector<64x1xf32>
      %66 = vector.broadcast %65 : vector<64x1xf32> to vector<64x128xf32>
      %67 = arith.mulf %59, %66 : vector<64x128xf32>
      %c0_38 = arith.constant 0 : index
      %c0_39 = arith.constant 0 : index
      %68 = vector.load %arg12[%c0_38, %c0_39] : memref<64x128xf32, #tpu.memory_space<vmem>>, vector<64x128xf32>
      tpu.vector_store %arg12[%c0_38, %c0_39], %67 {strides = array<i32>} : memref<64x128xf32, #tpu.memory_space<vmem>>, vector<64x128xf32>,
    } else {
    }
    return
  }
  func.func @transform_0(%arg0: i32) -> (i32, i32) {
    %c0_i32 = arith.constant 0 : i32
    %c0_i32_0 = arith.constant 0 : i32
    return %arg0, %c0_i32 : i32, i32
  }
  func.func @transform_1(%arg0: i32) -> (i32, i32) {
    %c0_i32 = arith.constant 0 : i32
    %c0_i32_0 = arith.constant 0 : i32
    return %arg0, %c0_i32 : i32, i32
  }
  func.func @transform_2(%arg0: i32) -> (i32, i32) {
    %c0_i32 = arith.constant 0 : i32
    %c0_i32_0 = arith.constant 0 : i32
    %c0_i32_1 = arith.constant 0 : i32
    return %c0_i32, %c0_i32_0 : i32, i32
  }
  func.func @transform_3(%arg0: i32) -> (i32, i32) {
    %c0_i32 = arith.constant 0 : i32
    %c0_i32_0 = arith.constant 0 : i32
    %c0_i32_1 = arith.constant 0 : i32
    return %c0_i32, %c0_i32_0 : i32, i32
  }
  func.func @transform_4(%arg0: i32) -> (i32, i32) {
    %c0_i32 = arith.constant 0 : i32
    %c0_i32_0 = arith.constant 0 : i32
    %c0_i32_1 = arith.constant 0 : i32
    return %c0_i32, %c0_i32_0 : i32, i32
  }
  func.func @transform_5(%arg0: i32) -> (i32, i32) {
    %c0_i32 = arith.constant 0 : i32
    %c0_i32_0 = arith.constant 0 : i32
    %c0_i32_1 = arith.constant 0 : i32
    return %c0_i32, %c0_i32_0 : i32, i32
  }
  func.func @transform_6(%arg0: i32) -> (i32, i32) {
    %c0_i32 = arith.constant 0 : i32
    %c0_i32_0 = arith.constant 0 : i32
    %c0_i32_1 = arith.constant 0 : i32
    return %c0_i32, %c0_i32_0 : i32, i32
  }
  func.func @transform_7(%arg0: i32) -> (i32, i32) {
    %c0_i32 = arith.constant 0 : i32
    %c0_i32_0 = arith.constant 0 : i32
    %c0_i32_1 = arith.constant 0 : i32
    return %c0_i32, %c0_i32_0 : i32, i32
  }
  func.func @transform_8(%arg0: i32) -> (i32, i32) {
    %c0_i32 = arith.constant 0 : i32
    %c0_i32_0 = arith.constant 0 : i32
    %c0_i32_1 = arith.constant 0 : i32
    return %c0_i32, %c0_i32_0 : i32, i32
  }
  func.func @transform_9(%arg0: i32) -> (i32, i32) {
    %c0_i32 = arith.constant 0 : i32
    %c0_i32_0 = arith.constant 0 : i32
    %c0_i32_1 = arith.constant 0 : i32
    return %c0_i32, %c0_i32_0 : i32, i32
  }
  func.func @transform_10(%arg0: i32) -> (i32, i32) {
    %c0_i32 = arith.constant 0 : i32
    %c0_i32_0 = arith.constant 0 : i32
    %c0_i32_1 = arith.constant 0 : i32
    return %c0_i32, %c0_i32_0 : i32, i32
  }
  func.func @transform_11(%arg0: i32) -> (i32, i32) {
    %c0_i32 = arith.constant 0 : i32
    %c0_i32_0 = arith.constant 0 : i32
    %c0_i32_1 = arith.constant 0 : i32
    return %c0_i32, %c0_i32_0 : i32, i32
  }
}

</mosaic_0001>

<bundles_post_ra>
// kernel: tpu_custom_call.1
= control target key start
LH: loop header
LB: loop body
LE: loop exit
PB: predicated region body
PF: predicated region fallthrough
CT: control target
= control target key end

     0   :  { %16 = vsyncpa [#allocation4], 0  ;;  %s3841_s0 = inlined_call_operand.vmem [shape: bf16[256,384], index: 0, kind: input, shape index: {}]   ;;  %s3842_s1 = inlined_call_operand.vmem [shape: f32[256,1], index: 1, kind: input, shape index: {}]   ;;  %s3843_s2 = inlined_call_operand.vmem [shape: bf16[384,16], index: 2, kind: input, shape index: {}]   ;;  %s3844_s3 = inlined_call_operand.vmem [shape: bf16[64,256], index: 3, kind: input, shape index: {}]   ;;  %s3845_s4 = inlined_call_operand.vmem [shape: f32[64,1], index: 4, kind: input, shape index: {}]   ;;  %s3846_s5 = inlined_call_operand.vmem [shape: bf16[16,128], index: 5, kind: input, shape index: {}]   ;;  %s3847_s6 = inlined_call_operand.hbm [shape: bf16[16,128], index: 6, kind: input, shape index: {}]   ;;  %s3848_s7 = inlined_call_operand.vmem [shape: f32[1,128], index: 7, kind: input, shape index: {}]   ;;  %s3849_s8 = inlined_call_operand.vmem [shape: bf16[128,128], index: 8, kind: input, shape index: {}]   ;;  %s3850_s9 = inlined_call_operand.hbm [shape: bf16[128,128], index: 9, kind: input, shape index: {}]   ;;  %s3851_s10 = inlined_call_operand.vmem [shape: f32[1,128], index: 10, kind: input, shape index: {}]   ;;  %s3852_s11 = inlined_call_operand.hbm [shape: f32[64,128], index: 11, kind: output, shape index: {}]  }
   0x1   :  { %17 = vsyncpa [#allocation7], 0 }
   0x2   :  { %18 = vsyncpa [#allocation5], 0  ;;  %s3373_s17 = smov 0  }
   0x3 LB: > { %s3379_s18 = sadd.s32 4294967295, %s3302_s17   ;;  %p2485_p0 = scmp.ge.s32.totalorder %s3302_s17, 1  ;;  %s3302_s17 = sphi %s3373_s17, %s24_s17  }
   0x4   : > { %p291_p1 = scmp.lt.s32.totalorder %s3302_s17, 3  ;;  %s3304_s19 = smov [#allocation3]  }
   0x5   : > { %s315_s20 = sshll.u32 %s3304_s19, 4  ;;  %p3019_p3 = scmp.eq.s32.totalorder %s3379_s18, 0  ;;  %s316_s20 = int_to_ptr.vmem [resolvable:$true] %s315_s20 }
   0x6   : > { %p3383_p2 = pnand %p2485_p0, %p291_p1  ;;  %s3305_s22 = smov [#allocation6]  }
   0x7   : > { %s334_s23 = sshll.u32 %s3305_s22, 4  ;;  %s3219_s25 = scalar_lea.vmem %s316_s20, 128  ;;  %s335_s23 = int_to_ptr.vmem [resolvable:$true] %s334_s23 }
   0x8   : > { %p3012_p4 = pneg %p3383_p2  ;;  %p3220_p7 = scmp.ne.s32.totalorder %s316_s20, %s3219_s25 }
   0x9   : > { %p3227_p10 = scmp.lt.s32.totalorder %s316_s20, %s316_s20  ;;  %p3228_p11 = scmp.lt.s32.totalorder %s3219_s25, %s3219_s25 }
   0xa   : > { %p3392_p5 = pnand %p3019_p3, %p3012_p4 }
   0xb   : > { %p3229_p12 = por %p3228_p11, %p3227_p10 }
   0xc   : > { %p3210_p6 = pneg %p3392_p5 }
   0xe   : > { %p3222_p8 = pnand %p3220_p7, %p3210_p6 }
  0x10   : > { %p3223_p9 = pneg %p3222_p8 }
  0x12   : > { %p3230_p13 = pnand %p3229_p12, %p3223_p9 }
  0x14   : > { %3233 = shalt.err (!%p3230_p13)
}
  0x15   : > { %s3306_s26 = smov 64   ;;  %s3307_s27 = smov 4  }
  0x16   : > { %3015 = dma.hbm_to_vmem [thread:$0]  (!%p3392_p5), %s3847_s6, 128, %s316_s20, [#allocation4], %s3306_s26, %s3306_s26, %s3307_s27  }
  0x17   : > { %s3245_s30 = scalar_lea.vmem %s335_s23, 1024  ;;  %p3253_p7 = scmp.lt.s32.totalorder %s335_s23, %s335_s23 }
  0x18   : > { %p3246_p0 = scmp.ne.s32.totalorder %s335_s23, %s3245_s30  ;;  %p3254_p8 = scmp.lt.s32.totalorder %s3245_s30, %s3245_s30 }
  0x1a   : > { %p3248_p1 = pnand %p3246_p0, %p3210_p6  ;;  %p3255_p10 = por %p3254_p8, %p3253_p7 }
  0x1c   : > { %p3249_p4 = pneg %p3248_p1 }
  0x1e   : > { %p3256_p9 = pnand %p3255_p10, %p3249_p4 }
  0x20   : > { %3259 = shalt.err (!%p3256_p9)
}
  0x21   : > { %3018 = dma.hbm_to_vmem [thread:$0]  (!%p3392_p5), %s3850_s9, 1024, %s335_s23, [#allocation7], %s3306_s26, %s3306_s26, %s3307_s27  }
  0x22   : > { %372 = sbr.rel (%p3383_p2) target bundleno = 1361 (0x551), region = 64 }
  0x27   : > { %3289 = dma.done.wait (%p3019_p3), [#allocation4], 128  }
  0x28   : > { %3291 = vsyncadd (%p3019_p3), [#allocation4], 4294967168 }
  0x29   : > { %3293 = dma.done.wait (%p3019_p3), [#allocation7], 1024  }
  0x2a   : > { %3295 = vsyncadd (%p3019_p3), [#allocation7], 4294966272  ;;  %v3308_v0 = vmov 0   ;;  %v3044_v1 = vld [vmem:[%s3843_s2 + $0x78] sm:$0xff]   ;;  %v3047_v4 = vld [vmem:[%s3843_s2 + $0x70] sm:$0xff]   ;;  %s2492_s13 = sshll.u32 %s3379_s18, 4 }
  0x2b   : > { %3043 = vset.pattern.permute.xlu1 %v3308_v0  ;;  %3042 = vset.pattern.permute.xlu0 %v3308_v0  ;;  %v3045_v2 = vld [vmem:[%s3843_s2 + $0x38] sm:$0xff]   ;;  %v3048_v5 = vld [vmem:[%s3843_s2 + $0x30] sm:$0xff]   ;;  %v3050_v7 = vld [vmem:[%s3843_s2 + $0x68] sm:$0xff]   ;;  %p418_p2 = scmp.lt.s32.totalorder %s2492_s13, 31  ;;  %s2496_s25 = sshll.u32 %s3379_s18, 7  ;;  %vm1168_vm0 = vcmask 130048  }
  0x2c   : > { %2703 = vmatprep.subr.bf16.mxu0 %v3044_v1  ;;  %v3046_v3 = vld [vmem:[%s3843_s2 + $0xb8] sm:$0xff]   ;;  %v3049_v6 = vld [vmem:[%s3843_s2 + $0xb0] sm:$0xff]   ;;  %v3051_v8 = vld [vmem:[%s3843_s2 + $0x28] sm:$0xff]   ;;  %s3562_s26 = sshra.s32 %s2496_s25, 3  ;;  %p2590_p3 = scmp.ne.s32.totalorder %s3379_s18, 1 }
  0x2d   : > { %2704 = vmatpush3.bf16.msra.mxu0 %v3045_v2  ;;  %2865 = vmatprep.subr.bf16.mxu1 %v3046_v3  ;;  %v3052_v9 = vld [vmem:[%s3843_s2 + $0xa8] sm:$0xff]   ;;  %v3053_v10 = vld [vmem:[%s3843_s2 + $0x60] sm:$0xff]   ;;  %v3056_v13 = vld [vmem:[%s3843_s2 + $0x58] sm:$0xff]   ;;  %s3856_s13 = smov (!%p418_p2, %s2492_s13), 31  ;;  %s2545_s27 = sshll.u32 %s3562_s26, 2 }
  0x2e   : > { %2866 = vmatpush3.bf16.msra.mxu1 %v3046_v3  ;;  %2705 = vmatprep.subr.bf16.mxu0 %v3047_v4  ;;  %v3054_v11 = vld [vmem:[%s3843_s2 + $0x20] sm:$0xff]   ;;  %v3058_v14 = vld [vmem:[%s3843_s2 + $0x98] sm:$0xff]   ;;  %v3059_v16 = vld [vmem:[%s3843_s2 + $0x50] sm:$0xff]   ;;  %s2999_s16 = smul.u32 12, %s3856_s13  ;;  %s2495_s20 = sshll.u32 %s3856_s13, 3 }
  0x2f   : > { %2867 = vmatprep.subr.bf16.mxu1 %v3049_v6  ;;  %v3055_v12 = vld [vmem:[%s3843_s2 + $0xa0] sm:$0xff]   ;;  %v3057_v15 = vld [vmem:[%s3843_s2 + $0x18] sm:$0xff]   ;;  %v3061_v17 = vld [vmem:[%s3843_s2 + $0x90] sm:$0xff]   ;;  %s3517_s23 = scalar_lea.vmem %s3842_s1, %s2495_s20  ;;  %s1093_s12 = scalar_lea.vmem %s3843_s2, %s2545_s27 }
  0x30   : > { %v3060_v18 = vld [vmem:[%s3843_s2 + $0x10] sm:$0xff]   ;;  %v3062_v19 = vld [vmem:[%s3843_s2 + $0x48] sm:$0xff]   ;;  %s3494_s29 = scalar_lea.vmem %s3841_s0, %s2999_s16  ;;  %v3065_v22 = vld [vmem:[%s3843_s2 + $0x40] sm:$0xff]   ;;  %s3704_s15 = scalar_lea.vmem [#allocation2], %s2545_s27 }
  0x31   : > { %2706 = vmatpush3.bf16.msra.mxu0 %v3048_v5  ;;  %v3063_v20 = vld [vmem:[%s3843_s2 + $0x8] sm:$0xff]   ;;  %v3067_v23 = vld [vmem:[%s3843_s2 + $0x80] sm:$0xff]   ;;  %v3080_v33 = vld [vmem:[%s3494_s29 + $0x50] ss:$12 sps:$4 sm:$0xff]  }
  0x32   : > { %2707 = vmatprep.subr.bf16.mxu0 %v3050_v7  ;;  %2868 = vmatpush3.bf16.msra.mxu1 %v3049_v6  ;;  %v3064_v21 = vld [vmem:[%s3843_s2 + $0x88] sm:$0xff]   ;;  %v3070_v24 = vld [vmem:[%s3494_s29 + $0x4] ss:$12 sps:$4 sm:$0xff]   ;;  %v3076_v32 = vld [vmem:[%s3494_s29 + $0x34] ss:$12 sps:$4 sm:$0xff]  }
  0x33   : > { %2869 = vmatprep.subr.bf16.mxu1 %v3052_v9  ;;  %v3071_v25 = vld [vmem:[%s3494_s29 + $0x8] ss:$12 sps:$4 sm:$0xff]   ;;  %v3066_v26 = vld [vmem:[%s3843_s2] sm:$0xff]   ;;  %816 = vmatprep.mubr.bf16.mxu0 %v3070_v24  ;;  %v3078_v39 = vld [vmem:[%s3494_s29 + $0x30] ss:$12 sps:$4 sm:$0xff]  }
  0x34   : > { %2881 = vmatprep.mubr.bf16.mxu1 %v3071_v25  ;;  %v3068_v27 = vld [vmem:[%s3494_s29] ss:$12 sps:$4 sm:$0xff]   ;;  %v3073_v28 = vld [vmem:[%s3494_s29 + $0x1c] ss:$12 sps:$4 sm:$0xff]   ;;  %v3079_v30 = vld [vmem:[%s3494_s29 + $0x38] ss:$12 sps:$4 sm:$0xff]  }
  0x35   : > { %2708 = vmatpush3.bf16.msra.mxu0 %v3051_v8  ;;  %v3072_v29 = vld [vmem:[%s3494_s29 + $0x20] ss:$12 sps:$4 sm:$0xff]   ;;  %v3075_v31 = vld [vmem:[%s3494_s29 + $0x18] ss:$12 sps:$4 sm:$0xff]   ;;  %v3087_v34 = vld [vmem:[%s3494_s29 + $0x68] ss:$12 sps:$4 sm:$0xff]  }
  0x36   : > { %2709 = vmatprep.subr.bf16.mxu0 %v3053_v10  ;;  %2870 = vmatpush3.bf16.msra.mxu1 %v3052_v9  ;;  %v986_v35 = vld [vmem:[%s3517_s23 + $0x40] sm:$0xff]  ;;  %v987_v37 = vld [vmem:[%s3517_s23 + $0x48] sm:$0xff]  ;;  %v981_v43 = vld [vmem:[%s3517_s23 + $0x18] sm:$0xff] }
  0x37   : > { %2871 = vmatprep.subr.bf16.mxu1 %v3055_v12  ;;  %1036 = vperm.xlu1 %3043, %v986_v35   ;;  %v978_v36 = vld [vmem:[%s3517_s23] sm:$0xff]  ;;  %v979_v38 = vld [vmem:[%s3517_s23 + $0x8] sm:$0xff]  ;;  %v980_v45 = vld [vmem:[%s3517_s23 + $0x10] sm:$0xff] }
  0x38   : > { %996 = vperm.xlu0 %3042, %v978_v36   ;;  %v3081_v40 = vld [vmem:[%s3494_s29 + $0x4c] ss:$12 sps:$4 sm:$0xff]   ;;  %v3533_v44 = vld [vmem:[%s3846_s5] sm:$0xff]   ;;  %v988_v48 = vld [vmem:[%s3517_s23 + $0x50] sm:$0xff] }
  0x39   : > { %2710 = vmatpush3.bf16.msra.mxu0 %v3054_v11  ;;  %v3088_v41 = vld [vmem:[%s3494_s29 + $0x80] ss:$12 sps:$4 sm:$0xff]   ;;  %v3095_v42 = vld [vmem:[%s3494_s29 + $0x98] ss:$12 sps:$4 sm:$0xff]   ;;  %v3083_v49 = vld [vmem:[%s3494_s29 + $0x48] ss:$12 sps:$4 sm:$0xff]  }
  0x3a   : > { %2711 = vmatprep.subr.bf16.mxu0 %v3056_v13  ;;  %2872 = vmatpush3.bf16.msra.mxu1 %v3055_v12  ;;  %v3101_v46 = vld [vmem:[#allocation3] sm:$0xff]   ;;  %v989_v47 = vld [vmem:[%s3517_s23 + $0x58] sm:$0xff]  ;;  %v983_v52 = vld [vmem:[%s3517_s23 + $0x28] sm:$0xff] }
  0x3b   : > { %2873 = vmatprep.subr.bf16.mxu1 %v3058_v14  ;;  %1041 = vperm.xlu1 %3043, %v987_v37   ;;  %v3084_v50 = vld [vmem:[%s3494_s29 + $0x64] ss:$12 sps:$4 sm:$0xff]   ;;  %v991_v54 = vld [vmem:[%s3517_s23 + $0x68] sm:$0xff]  ;;  %v985_v58 = vld [vmem:[%s3517_s23 + $0x38] sm:$0xff] }
  0x3c   : > { %1001 = vperm.xlu0 %3042, %v979_v38   ;;  %v3096_v51 = vld [vmem:[%s3494_s29 + $0xb0] ss:$12 sps:$4 sm:$0xff]   ;;  %v982_v53 = vld [vmem:[%s3517_s23 + $0x20] sm:$0xff]  ;;  %v3097_v1 = vld [vmem:[%s3494_s29 + $0xac] ss:$12 sps:$4 sm:$0xff]  }
  0x3d   : > { %2712 = vmatpush3.bf16.msra.mxu0 %v3057_v15  ;;  %v990_v55 = vld [vmem:[%s3517_s23 + $0x60] sm:$0xff]  ;;  %v3089_v57 = vld [vmem:[%s3494_s29 + $0x7c] ss:$12 sps:$4 sm:$0xff]   ;;  %v984_v59 = vld [vmem:[%s3517_s23 + $0x30] sm:$0xff] }
  0x3e   : > { %2713 = vmatprep.subr.bf16.mxu0 %v3059_v16  ;;  %2874 = vmatpush3.bf16.msra.mxu1 %v3058_v14  ;;  %v3086_v56 = vld [vmem:[%s3494_s29 + $0x60] ss:$12 sps:$4 sm:$0xff]   ;;  %v993_v60 = vld [vmem:[%s3517_s23 + $0x78] sm:$0xff]  ;;  %v992_v61 = vld [vmem:[%s3517_s23 + $0x70] sm:$0xff] }
  0x3f   : > { %2875 = vmatprep.subr.bf16.mxu1 %v3061_v17  ;;  %1011 = vperm.xlu1 %3043, %v981_v43   ;;  %v3091_v62 = vld [vmem:[%s3494_s29 + $0x78] ss:$12 sps:$4 sm:$0xff]   ;;  %v3092_v63 = vld [vmem:[%s3494_s29 + $0x94] ss:$12 sps:$4 sm:$0xff]   ;;  %v3094_v0 = vld [vmem:[%s3494_s29 + $0x90] ss:$12 sps:$4 sm:$0xff]  }
  0x40   : > { %1006 = vperm.xlu0 %3042, %v980_v45   ;;  %v3099_v2 = vld [vmem:[%s3494_s29 + $0xa8] ss:$12 sps:$4 sm:$0xff]   ;;  %v3102_v3 = vld [vmem:[%s1093_s12] sm:$0xff]   ;;  %v3105_v6 = vld [vmem:[%s1093_s12 + $0x18] sm:$0xff]  }
  0x41   : > { %2714 = vmatpush3.bf16.msra.mxu0 %v3060_v18  ;;  %v3103_v4 = vld [vmem:[%s1093_s12 + $0x8] sm:$0xff]   ;;  %v3104_v5 = vld [vmem:[%s1093_s12 + $0x10] sm:$0xff]   ;;  %v3106_v7 = vld [vmem:[%s1093_s12 + $0x20] sm:$0xff]  }
  0x42   : > { %2715 = vmatprep.subr.bf16.mxu0 %v3062_v19  ;;  %2876 = vmatpush3.bf16.msra.mxu1 %v3061_v17  ;;  %v3107_v8 = vld [vmem:[%s1093_s12 + $0x28] sm:$0xff]   ;;  %v3108_v9 = vld [vmem:[%s1093_s12 + $0x30] sm:$0xff]   ;;  %v3109_v10 = vld [vmem:[%s1093_s12 + $0x38] sm:$0xff]  }
  0x43   : > { %2877 = vmatprep.subr.bf16.mxu1 %v3064_v21  ;;  %1051 = vperm.xlu1 %3043, %v989_v47  }
  0x44   : > { %1046 = vperm.xlu0 %3042, %v988_v48  }
  0x45   : > { %2716 = vmatpush3.bf16.msra.mxu0 %v3063_v20 }
  0x46   : > { %2717 = vmatprep.subr.bf16.mxu0 %v3065_v22  ;;  %2878 = vmatpush3.bf16.msra.mxu1 %v3064_v21 }
  0x47   : > { %2879 = vmatprep.subr.bf16.mxu1 %v3067_v23  ;;  %1021 = vperm.xlu1 %3043, %v983_v52  }
  0x48   : > { %1016 = vperm.xlu0 %3042, %v982_v53  }
  0x49   : > { %2718 = vmatpush3.bf16.msra.mxu0 %v3066_v26 }
  0x4a   : > { %2880 = vmatpush3.bf16.msra.mxu1 %v3067_v23  ;;  %2915 = vmatprep.subr.bf16.mxu0 %v3533_v44 }
  0x4b   : > { %2897 = vmatprep.subr.bf16.mxu1 %v3101_v46  ;;  %1061 = vperm.xlu1 %3043, %v991_v54  }
  0x4c   : > { %817 = vmatmul.mubr.bf16.vlgmr.msra.gmra.mxu0 %v3068_v27  ;;  %1056 = vperm.xlu0 %3042, %v990_v55  }
  0x4d   : > { %824 = vmatprep.mubr.bf16.mxu0 %v3073_v28  ;;  %2882 = vmatmul.mubr.bf16.vlgmr.msra.gmra.mxu1 %v3072_v29 }
  0x4e   : > { %2885 = vmatprep.mubr.bf16.mxu1 %v3079_v30  ;;  %2916 = vmatpush3.bf16.msra.mxu0 %v3533_v44 }
  0x4f   : > { %2898 = vmatpush3.bf16.msra.mxu1 %v3101_v46  ;;  %1031 = vperm.xlu1 %3043, %v985_v58  }
  0x50   : > { %2981 = vmatprep.subr.bf16.mxu1 %v3533_v44  ;;  %1026 = vperm.xlu0 %3042, %v984_v59  }
  0x53   : > { %1071 = vperm.xlu1 %3043, %v993_v60  }
  0x54   : > { %825 = vmatmul.mubr.bf16.gmra.mxu0 %v3075_v31  ;;  %1066 = vperm.xlu0 %3042, %v992_v61  }
  0x55   : > { %832 = vmatprep.mubr.bf16.mxu0 %v3076_v32  ;;  %2886 = vmatmul.mubr.bf16.gmra.mxu1 %v3080_v33 }
  0x56   : > { %2889 = vmatprep.mubr.bf16.mxu1 %v3087_v34 }
  0x5c   : > { %833 = vmatmul.mubr.bf16.gmra.mxu0 %v3078_v39 }
  0x5d   : > { %840 = vmatprep.mubr.bf16.mxu0 %v3081_v40  ;;  %2890 = vmatmul.mubr.bf16.gmra.mxu1 %v3088_v41 }
  0x5e   : > { %2893 = vmatprep.mubr.bf16.mxu1 %v3095_v42 }
  0x64   : > { %841 = vmatmul.mubr.bf16.gmra.mxu0 %v3083_v49 }
  0x65   : > { %848 = vmatprep.mubr.bf16.mxu0 %v3084_v50  ;;  %2894 = vmatmul.mubr.bf16.gmra.mxu1 %v3096_v51 }
  0x66   : > { %2899 = vmatprep.mubr.msk.bf16.mxu1 %vm1168_vm0, %v3102_v3 }
  0x6c   : > { %849 = vmatmul.mubr.bf16.gmra.mxu0 %v3086_v56 }
  0x6d   : > { %856 = vmatprep.mubr.bf16.mxu0 %v3089_v57  ;;  %2900 = vmatmul.mubr.msk.bf16.vlgmr.msra.gmra.mxu1 %vm1168_vm0, %v3103_v4 }
  0x6e   : > { %2982 = vmatpush3.bf16.msra.mxu1 %v3533_v44  ;;  %2903 = vmatprep.mubr.msk.bf16.mxu1 %vm1168_vm0, %v3104_v5 }
  0x74   : > { %857 = vmatmul.mubr.bf16.gmra.mxu0 %v3091_v62 }
  0x75   : > { %864 = vmatprep.mubr.bf16.mxu0 %v3092_v63  ;;  %2904 = vmatmul.mubr.msk.bf16.gmra.mxu1 %vm1168_vm0, %v3105_v6 }
  0x76   : > { %2907 = vmatprep.mubr.msk.bf16.mxu1 %vm1168_vm0, %v3106_v7 }
  0x7c   : > { %865 = vmatmul.mubr.bf16.gmra.mxu0 %v3094_v0 }
  0x7d   : > { %872 = vmatprep.mubr.bf16.mxu0 %v3097_v1  ;;  %2908 = vmatmul.mubr.msk.bf16.gmra.mxu1 %vm1168_vm0, %v3107_v8 }
  0x7e   : > { %2911 = vmatprep.mubr.msk.bf16.mxu1 %vm1168_vm0, %v3108_v9 }
  0x84   : > { %873 = vmatmul.mubr.bf16.gmra.mxu0 %v3099_v2 }
  0x85   : > { %2912 = vmatmul.mubr.msk.bf16.gmra.mxu1 %vm1168_vm0, %v3109_v10 }
  0xb2   : > { %v3579_v11 = vpop.permute.xlu1 %1036 }
  0xb3   : > { %v997_v12 = vpop.permute.xlu0 %996 }
  0xb6   : > { %v3581_v17 = vpop.permute.xlu1 %1041 }
  0xb7   : > { %v1002_v18 = vpop.permute.xlu0 %1001 }
  0xba   : > { %v1012_v27 = vpop.permute.xlu1 %1011 }
  0xbb   : > { %v1007_v28 = vpop.permute.xlu0 %1006 }
  0xbe   : > { %v3583_v40 = vpop.permute.xlu1 %1051 }
  0xbf   : > { %v3585_v41 = vpop.permute.xlu0 %1046 }
  0xc2   : > { %v1022_v52 = vpop.permute.xlu1 %1021 }
  0xc3   : > { %v1017_v53 = vpop.permute.xlu0 %1016 }
  0xc6   : > { %v1062_v62 = vpop.permute.xlu1 %1061 }
  0xc7   : > { %v1057_v63 = vpop.permute.xlu0 %1056 }
  0xca   : > { %v1032_v10 = vpop.permute.xlu1 %1031 }
 0x10c   : > { %v2719_v13 = vpop.f32.mrf.mxu0 }
 0x10d   : > { %v2883_v15 = vpop.f32.mrf.mxu1 }
 0x10e   : > { %v2720_v14 = vpop.f32.mrf.mxu0 }
 0x10f   : > { %v2721_v16 = vadd.f32 %v2720_v14, %v2719_v13  ;;  %v915_v20 = vpop.f32.mrf.mxu1 }
 0x110   : > { %v2722_v19 = vpop.f32.mrf.mxu0 }
 0x111   : > { %v2884_v22 = vpop.f32.mrf.mxu1  ;;  %v916_v23 = vadd.f32 %v2721_v16, %v915_v20 }
 0x112   : > { %v2723_v21 = vpop.f32.mrf.mxu0 }
 0x113   : > { %v2724_v24 = vadd.f32 %v2723_v21, %v2722_v19  ;;  %v918_v26 = vpop.f32.mrf.mxu1  ;;  %v1074_v32 = vmul.f32 %v997_v12, %v916_v23  ;;  %v1027_v12 = vpop.permute.xlu0 %1026 }
 0x114   : > { %v2725_v25 = vpop.f32.mrf.mxu0 }
 0x115   : > { %v919_v29 = vadd.f32 %v2724_v24, %v918_v26  ;;  %v2887_v31 = vpop.f32.mrf.mxu1 }
 0x116   : > { %v2726_v30 = vpop.f32.mrf.mxu0 }
 0x117   : > { %v1075_v33 = vmul.f32 %v1002_v18, %v919_v29  ;;  %v2727_v34 = vadd.f32 %v2726_v30, %v2725_v25  ;;  %v931_v38 = vpop.f32.mrf.mxu1 }
 0x118   : > { %v2728_v35 = vpop.f32.mrf.mxu0 }
 0x119   : > { %v1110_v36 = vpack.c.bf16 %v1075_v33, %v1074_v32  ;;  %v924_v39 = vadd.f32 %v2883_v15, %v2727_v34  ;;  %v2888_v46 = vpop.f32.mrf.mxu1 }
 0x11a   : > { %v2729_v37 = vpop.f32.mrf.mxu0 }
 0x11b   : > { %v2730_v42 = vadd.f32 %v2729_v37, %v2728_v35  ;;  %2917 = vmatprep.mubr.msk.bf16.mxu0 %vm1168_vm0, %v1110_v36  ;;  %v1076_v47 = vmul.f32 %v1007_v28, %v924_v39  ;;  %v934_v55 = vpop.f32.mrf.mxu1 }
 0x11c   : > { %v2731_v43 = vpop.f32.mrf.mxu0 }
 0x11d   : > { %v927_v44 = vadd.f32 %v2884_v22, %v2730_v42  ;;  %v2891_v61 = vpop.f32.mrf.mxu1 }
 0x11e   : > { %v2732_v45 = vpop.f32.mrf.mxu0 }
 0x11f   : > { %v1077_v48 = vmul.f32 %v1012_v27, %v927_v44  ;;  %v2733_v49 = vadd.f32 %v2732_v45, %v2731_v43  ;;  %v947_v6 = vpop.f32.mrf.mxu1 }
 0x120   : > { %v2734_v50 = vpop.f32.mrf.mxu0 }
 0x121   : > { %v1111_v51 = vpack.c.bf16 %v1077_v48, %v1076_v47  ;;  %v932_v56 = vadd.f32 %v2733_v49, %v931_v38  ;;  %v2892_v15 = vpop.f32.mrf.mxu1 }
 0x122   : > { %v2735_v54 = vpop.f32.mrf.mxu0 }
 0x123   : > { %v2736_v57 = vadd.f32 %v2735_v54, %v2734_v50  ;;  %2918 = vmatmul.mubr.msk.bf16.vlgmr.msra.gmra.mxu0 %vm1168_vm0, %v1111_v51  ;;  %v1078_v0 = vmul.f32 %v1017_v53, %v932_v56  ;;  %v950_v23 = vpop.f32.mrf.mxu1 }
 0x124   : > { %v2737_v58 = vpop.f32.mrf.mxu0 }
 0x125   : > { %v935_v59 = vadd.f32 %v2736_v57, %v934_v55  ;;  %v2895_v29 = vpop.f32.mrf.mxu1 }
 0x126   : > { %v2738_v60 = vpop.f32.mrf.mxu0 }
 0x127   : > { %v1079_v1 = vmul.f32 %v1022_v52, %v935_v59  ;;  %v2739_v2 = vadd.f32 %v2738_v60, %v2737_v58  ;;  %v963_v36 = vpop.f32.mrf.mxu1 }
 0x128   : > { %v2740_v3 = vpop.f32.mrf.mxu0 }
 0x129   : > { %v1112_v4 = vpack.c.bf16 %v1079_v1, %v1078_v0  ;;  %v940_v7 = vadd.f32 %v2887_v31, %v2739_v2  ;;  %v2896_v44 = vpop.f32.mrf.mxu1  ;;  %v1072_v0 = vpop.permute.xlu1 %1071 }
 0x12a   : > { %v2741_v5 = vpop.f32.mrf.mxu0  ;;  %v1067_v1 = vpop.permute.xlu0 %1066 }
 0x12b   : > { %v2742_v8 = vadd.f32 %v2741_v5, %v2740_v3  ;;  %2921 = vmatprep.mubr.msk.bf16.mxu0 %vm1168_vm0, %v1112_v4  ;;  %v1080_v16 = vmul.f32 %v1027_v12, %v940_v7  ;;  %v966_v49 = vpop.f32.mrf.mxu1 }
 0x12c   : > { %v2743_v9 = vpop.f32.mrf.mxu0 }
 0x12d   : > { %v943_v13 = vadd.f32 %v2888_v46, %v2742_v8  ;;  %v2901_v5 = vpop.f32.mrf.mxu1 }
 0x12e   : > { %v2744_v14 = vpop.f32.mrf.mxu0 }
 0x12f   : > { %v1081_v18 = vmul.f32 %v1032_v10, %v943_v13  ;;  %v2745_v19 = vadd.f32 %v2744_v14, %v2743_v9  ;;  %v3602_v13 = vld [vmem:[%s3848_s7] ss:$0 sm:$0xff] }
 0x130   : > { %v2746_v20 = vpop.f32.mrf.mxu0 }
 0x131   : > { %v1113_v21 = vpack.c.bf16 %v1081_v18, %v1080_v16  ;;  %v948_v24 = vadd.f32 %v2745_v19, %v947_v6  ;;  %v1227_v6 = vpop.f32.mrf.mxu1 }
 0x132   : > { %v2747_v22 = vpop.f32.mrf.mxu0 }
 0x133   : > { %v2748_v25 = vadd.f32 %v2747_v22, %v2746_v20  ;;  %2922 = vmatmul.mubr.msk.bf16.gmra.mxu0 %vm1168_vm0, %v1113_v21  ;;  %v1082_v30 = vmul.f32 %v3579_v11, %v948_v24 }
 0x134   : > { %v2749_v26 = vpop.f32.mrf.mxu0 }
 0x135   : > { %v951_v27 = vadd.f32 %v2748_v25, %v950_v23 }
 0x136   : > { %v2750_v28 = vpop.f32.mrf.mxu0 }
 0x137   : > { %v1083_v31 = vmul.f32 %v3581_v17, %v951_v27  ;;  %v2751_v32 = vadd.f32 %v2750_v28, %v2749_v26 }
 0x138   : > { %v2752_v33 = vpop.f32.mrf.mxu0 }
 0x139   : > { %v1114_v34 = vpack.c.bf16 %v1083_v31, %v1082_v30  ;;  %v956_v37 = vadd.f32 %v2891_v61, %v2751_v32 }
 0x13a   : > { %v2753_v35 = vpop.f32.mrf.mxu0 }
 0x13b   : > { %v2754_v38 = vadd.f32 %v2753_v35, %v2752_v33  ;;  %2925 = vmatprep.mubr.msk.bf16.mxu1 %vm1168_vm0, %v1114_v34  ;;  %v1084_v45 = vmul.f32 %v3585_v41, %v956_v37 }
 0x13c   : > { %v2755_v39 = vpop.f32.mrf.mxu0 }
 0x13d   : > { %v959_v42 = vadd.f32 %v2892_v15, %v2754_v38 }
 0x13e   : > { %v2756_v43 = vpop.f32.mrf.mxu0 }
 0x13f   : > { %v1085_v46 = vmul.f32 %v3583_v40, %v959_v42  ;;  %v2757_v11 = vadd.f32 %v2756_v43, %v2755_v39 }
 0x140   : > { %v2758_v47 = vpop.f32.mrf.mxu0 }
 0x141   : > { %v1115_v17 = vpack.c.bf16 %v1085_v46, %v1084_v45  ;;  %v964_v50 = vadd.f32 %v2757_v11, %v963_v36 }
 0x142   : > { %v2759_v48 = vpop.f32.mrf.mxu0 }
 0x143   : > { %v2760_v51 = vadd.f32 %v2759_v48, %v2758_v47  ;;  %2926 = vmatmul.mubr.msk.bf16.vlgmr.msra.gmra.mxu1 %vm1168_vm0, %v1115_v17  ;;  %v1086_v55 = vmul.f32 %v1057_v63, %v964_v50  ;;  %v2902_v63 = vpop.f32.mrf.mxu1 }
 0x144   : > { %v2761_v52 = vpop.f32.mrf.mxu0 }
 0x145   : > { %v967_v53 = vadd.f32 %v2760_v51, %v966_v49 }
 0x146   : > { %v2762_v54 = vpop.f32.mrf.mxu0 }
 0x147   : > { %v1087_v56 = vmul.f32 %v1062_v62, %v967_v53  ;;  %v2763_v57 = vadd.f32 %v2762_v54, %v2761_v52  ;;  %v1230_v62 = vpop.f32.mrf.mxu1 }
 0x148   : > { %v2764_v58 = vpop.f32.mrf.mxu0 }
 0x149   : > { %v1116_v59 = vpack.c.bf16 %v1087_v56, %v1086_v55  ;;  %v972_v60 = vadd.f32 %v2895_v29, %v2763_v57  ;;  %v2905_v7 = vpop.f32.mrf.mxu1 }
 0x14a   : > { %v2765_v41 = vpop.f32.mrf.mxu0 }
 0x14b   : > { %v2766_v40 = vadd.f32 %v2765_v41, %v2764_v58  ;;  %2929 = vmatprep.mubr.msk.bf16.mxu1 %vm1168_vm0, %v1116_v59  ;;  %v1088_v2 = vmul.f32 %v1067_v1, %v972_v60  ;;  %v1243_v8 = vpop.f32.mrf.mxu1 }
 0x14d   : > { %v975_v61 = vadd.f32 %v2896_v44, %v2766_v40  ;;  %v2906_v9 = vpop.f32.mrf.mxu1 }
 0x14f   : > { %v1089_v3 = vmul.f32 %v1072_v0, %v975_v61  ;;  %v1246_v10 = vpop.f32.mrf.mxu1 }
 0x151   : > { %v1117_v4 = vpack.c.bf16 %v1089_v3, %v1088_v2  ;;  %v2909_v14 = vpop.f32.mrf.mxu1 }
 0x153   : > { %2930 = vmatmul.mubr.msk.bf16.gmra.mxu1 %vm1168_vm0, %v1117_v4  ;;  %v1259_v21 = vpop.f32.mrf.mxu1 }
 0x155   : > { %v2910_v27 = vpop.f32.mrf.mxu1 }
 0x157   : > { %v1262_v32 = vpop.f32.mrf.mxu1 }
 0x159   : > { %v2913_v35 = vpop.f32.mrf.mxu1 }
 0x15b   : > { %v1275_v43 = vpop.f32.mrf.mxu1 }
 0x15d   : > { %v2914_v48 = vpop.f32.mrf.mxu1 }
 0x15f   : > { %v1278_v52 = vpop.f32.mrf.mxu1 }
 0x1e3   : > { %v2919_v12 = vpop.f32.mrf.mxu0 }
 0x1e4   : > { %v1363_v15 = vadd.f32 %v2919_v12, %v2901_v5 }
 0x1e5   : > { %v1354_v16 = vpop.f32.mrf.mxu0 }
 0x1e6   : > { %v3605_v18 = vadd.f32 %v3602_v13, %v1363_v15  ;;  %v1355_v19 = vadd.f32 %v1354_v16, %v1227_v6 }
 0x1e7   : > { %v2920_v20 = vpop.f32.mrf.mxu0 }
 0x1e8   : > { %v3608_v22 = vadd.f32 %v3602_v13, %v1355_v19  ;;  %v1366_v23 = vadd.f32 %v2920_v20, %v2902_v63  ;;  %v1442_v24 = vmul.f32 %v3605_v18, %v3605_v18 }
 0x1e9   : > { %v1357_v25 = vpop.f32.mrf.mxu0 }
 0x1ea   : > { %v1358_v26 = vadd.f32 %v1357_v25, %v1230_v62  ;;  %1460 = vadd.xlane.f32.xlu0 %v1442_v24  ;;  %v3613_v28 = vadd.f32 %v3602_v13, %v1366_v23  ;;  %v1440_v30 = vmul.f32 %v3608_v22, %v3608_v22 }
 0x1ec   : > { %v3616_v29 = vadd.f32 %v3602_v13, %v1358_v26  ;;  %v1443_v33 = vmul.f32 %v3613_v28, %v3613_v28 }
 0x1ee   : > { %1456 = vadd.xlane.f32.xlu0 %v1440_v30  ;;  %v1441_v31 = vmul.f32 %v3616_v29, %v3616_v29 }
 0x1f0   : > { %1458 = vadd.xlane.f32.xlu1 %v1441_v31 }
 0x1f2   : > { %1462 = vadd.xlane.f32.xlu0 %v1443_v33 }
 0x1f3   : > { %v2923_v34 = vpop.f32.mrf.mxu0 }
 0x1f4   : > { %v1379_v36 = vadd.f32 %v2923_v34, %v2905_v7  ;;  %v1552_v34 = vlaneseq }
 0x1f5   : > { %v1370_v37 = vpop.f32.mrf.mxu0 }
 0x1f6   : > { %v3625_v38 = vadd.f32 %v3602_v13, %v1379_v36  ;;  %v1371_v39 = vadd.f32 %v1370_v37, %v1243_v8 }
 0x1f7   : > { %v2924_v42 = vpop.f32.mrf.mxu0 }
 0x1f8   : > { %v3628_v44 = vadd.f32 %v3602_v13, %v1371_v39  ;;  %v1382_v45 = vadd.f32 %v2924_v42, %v2906_v9  ;;  %v1446_v46 = vmul.f32 %v3625_v38, %v3625_v38 }
 0x1f9   : > { %v1373_v11 = vpop.f32.mrf.mxu0 }
 0x1fa   : > { %v3633_v47 = vadd.f32 %v3602_v13, %v1382_v45  ;;  %v1374_v17 = vadd.f32 %v1373_v11, %v1246_v10  ;;  %1468 = vadd.xlane.f32.xlu1 %v1446_v46  ;;  %v1444_v50 = vmul.f32 %v3628_v44, %v3628_v44  ;;  %v3691_v46 = vstv %s2496_s25 }
 0x1fc   : > { %v3636_v49 = vadd.f32 %v3602_v13, %v1374_v17  ;;  %v1447_v51 = vmul.f32 %v3633_v47, %v3633_v47 }
 0x1fe   : > { %1464 = vadd.xlane.f32.xlu1 %v1444_v50  ;;  %1470 = vadd.xlane.f32.xlu0 %v1447_v51  ;;  %v1445_v53 = vmul.f32 %v3636_v49, %v3636_v49 }
 0x202   : > { %1466 = vadd.xlane.f32.xlu0 %v1445_v53 }
 0x203   : > { %v2927_v54 = vpop.f32.mrf.mxu1 }
 0x204   : > { %v1395_v55 = vadd.f32 %v2927_v54, %v2909_v14 }
 0x205   : > { %v1386_v56 = vpop.f32.mrf.mxu1 }
 0x206   : > { %v3645_v57 = vadd.f32 %v3602_v13, %v1395_v55  ;;  %v1387_v58 = vadd.f32 %v1386_v56, %v1259_v21 }
 0x207   : > { %v2928_v59 = vpop.f32.mrf.mxu1 }
 0x208   : > { %v3648_v41 = vadd.f32 %v3602_v13, %v1387_v58  ;;  %v1398_v60 = vadd.f32 %v2928_v59, %v2910_v27  ;;  %v1450_v40 = vmul.f32 %v3645_v57, %v3645_v57 }
 0x209   : > { %v1389_v61 = vpop.f32.mrf.mxu1 }
 0x20a   : > { %v3653_v0 = vadd.f32 %v3602_v13, %v1398_v60  ;;  %v1390_v1 = vadd.f32 %v1389_v61, %v1262_v32  ;;  %1476 = vadd.xlane.f32.xlu1 %v1450_v40  ;;  %v1448_v3 = vmul.f32 %v3648_v41, %v3648_v41 }
 0x20c   : > { %v3656_v2 = vadd.f32 %v3602_v13, %v1390_v1  ;;  %v1451_v4 = vmul.f32 %v3653_v0, %v3653_v0 }
 0x20e   : > { %1472 = vadd.xlane.f32.xlu1 %v1448_v3  ;;  %1478 = vadd.xlane.f32.xlu0 %v1451_v4  ;;  %v1449_v5 = vmul.f32 %v3656_v2, %v3656_v2 }
 0x212   : > { %1474 = vadd.xlane.f32.xlu0 %v1449_v5 }
 0x213   : > { %v2931_v6 = vpop.f32.mrf.mxu1 }
 0x214   : > { %v1411_v62 = vadd.f32 %v2931_v6, %v2913_v35  ;;  %v3684_v35 = vshrl.u32 %v1552_v34, 7 }
 0x215   : > { %v1402_v63 = vpop.f32.mrf.mxu1 }
 0x216   : > { %v1403_v7 = vadd.f32 %v1402_v63, %v1275_v43  ;;  %v3668_v12 = vadd.f32 %v3602_v13, %v1411_v62  ;;  %v1554_v36 = vadd.s32 8, %v3684_v35  ;;  %v1555_v43 = vadd.s32 16, %v3684_v35 }
 0x217   : > { %v2932_v8 = vpop.f32.mrf.mxu1  ;;  %v1556_v45 = vadd.s32 24, %v3684_v35  ;;  %v1570_v17 = vadd.s32 %v3691_v46, %v3684_v35 }
 0x218   : > { %v3665_v9 = vadd.f32 %v3602_v13, %v1403_v7  ;;  %v1414_v14 = vadd.f32 %v2932_v8, %v2914_v48  ;;  %v1454_v21 = vmul.f32 %v3668_v12, %v3668_v12  ;;  %v1571_v48 = vadd.s32 %v3691_v46, %v1554_v36 }
 0x219   : > { %v1405_v10 = vpop.f32.mrf.mxu1  ;;  %v1572_v58 = vadd.s32 %v3691_v46, %v1555_v43  ;;  %v1573_v59 = vadd.s32 %v3691_v46, %v1556_v45  ;;  %vm1586_vm1 = vcmp.lt.s32.totalorder %v1570_v17, 160 }
 0x21a   : > { %v1406_v15 = vadd.f32 %v1405_v10, %v1278_v52  ;;  %v1452_v16 = vmul.f32 %v3665_v9, %v3665_v9  ;;  %v3676_v20 = vadd.f32 %v3602_v13, %v1414_v14  ;;  %vm1587_vm2 = vcmp.lt.s32.totalorder %v1571_v48, 160 }
 0x21b   : > { %vm1588_vm3 = vcmp.lt.s32.totalorder %v1572_v58, 160  ;;  %vm1589_vm4 = vcmp.lt.s32.totalorder %v1573_v59, 160  ;;  %v1559_v10 = vadd.s32 48, %v3684_v35 }
 0x21c   : > { %v3673_v19 = vadd.f32 %v3602_v13, %v1406_v15  ;;  %1480 = vadd.xlane.f32.xlu1 %v1452_v16  ;;  %v1455_v24 = vmul.f32 %v3676_v20, %v3676_v20 }
 0x21e   : > { %v1453_v23 = vmul.f32 %v3673_v19, %v3673_v19 }
 0x220   : > { %1484 = vadd.xlane.f32.xlu1 %v1454_v21  ;;  %1482 = vadd.xlane.f32.xlu0 %v1453_v23  ;;  %v1557_v23 = vadd.s32 32, %v3684_v35 }
 0x224   : > { %1486 = vadd.xlane.f32.xlu0 %v1455_v24  ;;  %v1558_v24 = vadd.s32 40, %v3684_v35 }
 0x273   : > { %v1461_v25 = vpop.xlane.xlu0 %1460 }
 0x274   : > { %v1490_v26 = vmax.f32 %v1461_v25, 1e-24  ;;  %v1576_v25 = vadd.s32 %v3691_v46, %v1559_v10 }
 0x276   : > { %3110 = vrsqrt.f32 %v1490_v26  ;;  %vm1592_vm5 = vcmp.lt.s32.totalorder %v1576_v25, 160 }
 0x277   : > { %v1457_v27 = vpop.xlane.xlu0 %1456 }
 0x278   : > { %v1488_v30 = vmax.f32 %v1457_v27, 1e-24 }
 0x279   : > { %v1459_v13 = vpop.xlane.xlu1 %1458 }
 0x27a   : > { %3112 = vrsqrt.f32 %v1488_v30  ;;  %v1489_v31 = vmax.f32 %v1459_v13, 1e-24 }
 0x27b   : > { %v1463_v32 = vpop.xlane.xlu0 %1462 }
 0x27c   : > { %3114 = vrsqrt.f32 %v1489_v31  ;;  %v1491_v33 = vmax.f32 %v1463_v32, 1e-24 }
 0x27e   : > { %3116 = vrsqrt.f32 %v1491_v33 }
 0x283   : > { %v1469_v37 = vpop.xlane.xlu1 %1468  ;;  %v3111_v42 = vpop.eup %3110 }
 0x284   : > { %v1494_v39 = vmax.f32 %v1469_v37, 1e-24  ;;  %v1522_v52 = vmul.f32 %v3111_v42, %v3605_v18 }
 0x286   : > { %3118 = vrsqrt.f32 %v1494_v39  ;;  %v1538_v18 = vmax.f32 %v1522_v52, 0.0  ;;  %v1575_v39 = vadd.s32 %v3691_v46, %v1558_v24 }
 0x287   : > { %v3113_v11 = vpop.eup %3112  ;;  %v1465_v50 = vpop.xlane.xlu1 %1464 }
 0x288   : > { %v1471_v51 = vpop.xlane.xlu0 %1470  ;;  %v1520_v53 = vmul.f32 %v3113_v11, %v3608_v22  ;;  %v1492_v54 = vmax.f32 %v1465_v50, 1e-24  ;;  %vm1591_vm8 = vcmp.lt.s32.totalorder %v1575_v39, 160 }
 0x289   : > { %v1495_v55 = vmax.f32 %v1471_v51, 1e-24  ;;  %v3115_v56 = vpop.eup %3114 }
 0x28a   : > { %v1536_v60 = vmax.f32 %v1520_v53, 0.0  ;;  %v1521_v40 = vmul.f32 %v3115_v56, %v3616_v29  ;;  %3120 = vrsqrt.f32 %v1492_v54  ;;  %v1636_v29 = vsel %vm1588_vm3, %v1538_v18, 0.0 }
 0x28b   : > { %v3117_v61 = vpop.eup %3116  ;;  %3122 = vrsqrt.f32 %v1495_v55  ;;  %v1563_v55 = vadd.s32 80, %v3684_v35  ;;  %v1564_v56 = vadd.s32 88, %v3684_v35 }
 0x28c   : > { %v1467_v1 = vpop.xlane.xlu0 %1466  ;;  %v1537_v3 = vmax.f32 %v1521_v40, 0.0  ;;  %v1523_v22 = vmul.f32 %v3117_v61, %v3613_v28  ;;  %v1634_v5 = vsel %vm1586_vm1, %v1536_v60, 0.0  ;;  %v1560_v28 = vadd.s32 56, %v3684_v35 }
 0x28d   : > { %v1493_v4 = vmax.f32 %v1467_v1, 1e-24  ;;  %v1562_v60 = vadd.s32 72, %v3684_v35  ;;  %v1580_v61 = vadd.s32 %v3691_v46, %v1563_v55  ;;  %v1581_v1 = vadd.s32 %v3691_v46, %v1564_v56 }
 0x28e   : > { %v1635_v6 = vsel %vm1587_vm2, %v1537_v3, 0.0  ;;  %v1539_v63 = vmax.f32 %v1523_v22, 0.0  ;;  %v1577_v26 = vadd.s32 %v3691_v46, %v1560_v28 }
 0x28f   : > { %3124 = vrsqrt.f32 %v1493_v4  ;;  %v2659_v62 = vpack.c.bf16 %v1635_v6, %v1634_v5  ;;  %vm1596_vm9 = vcmp.lt.s32.totalorder %v1580_v61, 160  ;;  %vm1597_vm10 = vcmp.lt.s32.totalorder %v1581_v1, 160 }
 0x290   : > { %v1637_v7 = vsel %vm1589_vm4, %v1539_v63, 0.0  ;;  %vm1593_vm6 = vcmp.lt.s32.totalorder %v1577_v26, 160 }
 0x291   : > { %2660 = vst [vmem:[%s3704_s15] sm:$0xff] %v2659_v62   ;;  %v2664_v8 = vpack.c.bf16 %v1637_v7, %v1636_v29 }
 0x293   : > { %v3119_v14 = vpop.eup %3118  ;;  %2696 = vst [vmem:[%s3704_s15 + $0x8] sm:$0xff] %v2664_v8   ;;  %v1477_v15 = vpop.xlane.xlu1 %1476 }
 0x294   : > { %v1498_v16 = vmax.f32 %v1477_v15, 1e-24  ;;  %v1526_v21 = vmul.f32 %v3119_v14, %v3625_v38  ;;  %v1574_v38 = vadd.s32 %v3691_v46, %v1557_v23 }
 0x296   : > { %3126 = vrsqrt.f32 %v1498_v16  ;;  %v1542_v36 = vmax.f32 %v1526_v21, 0.0  ;;  %vm1590_vm7 = vcmp.lt.s32.totalorder %v1574_v38, 160 }
 0x297   : > { %v3121_v27 = vpop.eup %3120  ;;  %v1473_v30 = vpop.xlane.xlu1 %1472 }
 0x298   : > { %v1479_v13 = vpop.xlane.xlu0 %1478  ;;  %v3123_v31 = vpop.eup %3122  ;;  %v1524_v32 = vmul.f32 %v3121_v27, %v3628_v44  ;;  %v1496_v33 = vmax.f32 %v1473_v30, 1e-24  ;;  %v1640_v48 = vsel %vm1592_vm5, %v1542_v36, 0.0  ;;  %v1565_v30 = vadd.s32 96, %v3684_v35 }
 0x299   : > { %v1499_v34 = vmax.f32 %v1479_v13, 1e-24  ;;  %v1527_v37 = vmul.f32 %v3123_v31, %v3633_v47  ;;  %v1566_v13 = vadd.s32 104, %v3684_v35 }
 0x29a   : > { %3128 = vrsqrt.f32 %v1496_v33  ;;  %v1540_v11 = vmax.f32 %v1524_v32, 0.0  ;;  %v1567_v32 = vadd.s32 112, %v3684_v35  ;;  %v1568_v33 = vadd.s32 120, %v3684_v35 }
 0x29b   : > { %v1543_v43 = vmax.f32 %v1527_v37, 0.0  ;;  %3130 = vrsqrt.f32 %v1499_v34  ;;  %v1582_v34 = vadd.s32 %v3691_v46, %v1565_v30  ;;  %v1583_v36 = vadd.s32 %v3691_v46, %v1566_v13 }
 0x29c   : > { %v3125_v42 = vpop.eup %3124  ;;  %v1475_v45 = vpop.xlane.xlu0 %1474  ;;  %v1638_v52 = vsel %vm1590_vm7, %v1540_v11, 0.0 }
 0x29d   : > { %v1525_v44 = vmul.f32 %v3125_v42, %v3636_v49  ;;  %v1497_v17 = vmax.f32 %v1475_v45, 1e-24  ;;  %v1641_v50 = vsel %vm1593_vm6, %v1543_v43, 0.0  ;;  %v1561_v49 = vadd.s32 64, %v3684_v35 }
 0x29e   : > { %v2674_v47 = vpack.c.bf16 %v1641_v50, %v1640_v48  ;;  %v1584_v43 = vadd.s32 %v3691_v46, %v1567_v32  ;;  %vm1598_vm13 = vcmp.lt.s32.totalorder %v1582_v34, 160  ;;  %vm1599_vm14 = vcmp.lt.s32.totalorder %v1583_v36, 160 }
 0x29f   : > { %v1541_v51 = vmax.f32 %v1525_v44, 0.0  ;;  %3132 = vrsqrt.f32 %v1497_v17  ;;  %v1578_v4 = vadd.s32 %v3691_v46, %v1561_v49 }
 0x2a0   : > { %2698 = vst [vmem:[%s3704_s15 + $0x18] sm:$0xff] %v2674_v47   ;;  %vm1600_vm15 = vcmp.lt.s32.totalorder %v1584_v43, 160 }
 0x2a1   : > { %v1639_v53 = vsel %vm1591_vm8, %v1541_v51, 0.0  ;;  %vm1594_vm11 = vcmp.lt.s32.totalorder %v1578_v4, 160 }
 0x2a2   : > { %v2669_v54 = vpack.c.bf16 %v1639_v53, %v1638_v52 }
 0x2a3   : > { %v3127_v58 = vpop.eup %3126 }
 0x2a4   : > { %2697 = vst [vmem:[%s3704_s15 + $0x10] sm:$0xff] %v2669_v54   ;;  %v1530_v59 = vmul.f32 %v3127_v58, %v3645_v57  ;;  %v1579_v57 = vadd.s32 %v3691_v46, %v1562_v60 }
 0x2a5   : > { %v1481_v40 = vpop.xlane.xlu1 %1480 }
 0x2a6   : > { %v1500_v18 = vmax.f32 %v1481_v40, 1e-24  ;;  %v1546_v6 = vmax.f32 %v1530_v59, 0.0  ;;  %vm1595_vm12 = vcmp.lt.s32.totalorder %v1579_v57, 160 }
 0x2a7   : > { %v3129_v3 = vpop.eup %3128 }
 0x2a8   : > { %v3131_v22 = vpop.eup %3130  ;;  %v1528_v5 = vmul.f32 %v3129_v3, %v3648_v41  ;;  %3134 = vrsqrt.f32 %v1500_v18  ;;  %v1644_v15 = vsel %vm1596_vm9, %v1546_v6, 0.0 }
 0x2a9   : > { %v1531_v63 = vmul.f32 %v3131_v22, %v3653_v0  ;;  %v1485_v62 = vpop.xlane.xlu1 %1484  ;;  %v1483_v29 = vpop.xlane.xlu0 %1482 }
 0x2aa   : > { %v1502_v7 = vmax.f32 %v1485_v62, 1e-24  ;;  %v1501_v8 = vmax.f32 %v1483_v29, 1e-24  ;;  %v1544_v14 = vmax.f32 %v1528_v5, 0.0 }
 0x2ab   : > { %v1547_v28 = vmax.f32 %v1531_v63, 0.0 }
 0x2ac   : > { %v3133_v10 = vpop.eup %3132  ;;  %3136 = vrsqrt.f32 %v1502_v7  ;;  %v1642_v25 = vsel %vm1594_vm11, %v1544_v14, 0.0 }
 0x2ad   : > { %v1529_v41 = vmul.f32 %v3133_v10, %v3656_v2  ;;  %v1645_v16 = vsel %vm1597_vm10, %v1547_v28, 0.0  ;;  %3138 = vrsqrt.f32 %v1501_v8  ;;  %v1487_v0 = vpop.xlane.xlu0 %1486 }
 0x2ae   : > { %v2684_v21 = vpack.c.bf16 %v1645_v16, %v1644_v15  ;;  %v1503_v24 = vmax.f32 %v1487_v0, 1e-24 }
 0x2af   : > { %v1545_v23 = vmax.f32 %v1529_v41, 0.0 }
 0x2b0   : > { %2700 = vst [vmem:[%s3704_s15 + $0x28] sm:$0xff] %v2684_v21   ;;  %3140 = vrsqrt.f32 %v1503_v24 }
 0x2b1   : > { %v1643_v26 = vsel %vm1595_vm12, %v1545_v23, 0.0 }
 0x2b2   : > { %v2679_v27 = vpack.c.bf16 %v1643_v26, %v1642_v25 }
 0x2b4   : > { %2699 = vst [vmem:[%s3704_s15 + $0x20] sm:$0xff] %v2679_v27  }
 0x2b5   : > { %v3135_v2 = vpop.eup %3134 }
 0x2b6   : > { %v1532_v31 = vmul.f32 %v3135_v2, %v3665_v9  ;;  %v1585_v9 = vadd.s32 %v3691_v46, %v1568_v33 }
 0x2b8   : > { %v1548_v42 = vmax.f32 %v1532_v31, 0.0  ;;  %vm1601_vm0 = vcmp.lt.s32.totalorder %v1585_v9, 160 }
 0x2b9   : > { %v3137_v38 = vpop.eup %3136 }
 0x2ba   : > { %v3139_v37 = vpop.eup %3138  ;;  %v1534_v39 = vmul.f32 %v3137_v38, %v3668_v12  ;;  %v1646_v48 = vsel %vm1598_vm13, %v1548_v42, 0.0 }
 0x2bb   : > { %v1533_v45 = vmul.f32 %v3139_v37, %v3673_v19 }
 0x2bc   : > { %v1550_v44 = vmax.f32 %v1534_v39, 0.0 }
 0x2bd   : > { %v3141_v35 = vpop.eup %3140  ;;  %v1549_v11 = vmax.f32 %v1533_v45, 0.0 }
 0x2be   : > { %v1535_v17 = vmul.f32 %v3141_v35, %v3676_v20  ;;  %v1648_v51 = vsel %vm1600_vm15, %v1550_v44, 0.0 }
 0x2bf   : > { %v1647_v50 = vsel %vm1599_vm14, %v1549_v11, 0.0 }
 0x2c0   : > { %v2689_v12 = vpack.c.bf16 %v1647_v50, %v1646_v48  ;;  %v1551_v47 = vmax.f32 %v1535_v17, 0.0 }
 0x2c1   : > { %1735 = sbr.rel (%p2590_p3) target bundleno = 1345 (0x541), region = 76 }
 0x2c2   : > { %2701 = vst [vmem:[%s3704_s15 + $0x30] sm:$0xff] %v2689_v12   ;;  %v1649_v52 = vsel %vm1601_vm0, %v1551_v47, 0.0 }
 0x2c3   : > { %v2694_v19 = vpack.c.bf16 %v1649_v52, %v1648_v51 }
 0x2c5   : > { %2702 = vst [vmem:[%s3704_s15 + $0x38] sm:$0xff] %v2694_v19  }
 0x2c6   : > { %v3309_v54 = vmov 0   ;;  %v3162_v1 = vld [vmem:[%s3844_s3 + $0x4] ss:$8 sps:$4 sm:$0xff]   ;;  %v3173_v7 = vld [vmem:[#allocation6 + $0x30] sm:$0xff]   ;;  %v1979_v8 = vld [vmem:[%s3845_s4 + $0x10] sm:$0xff] }
 0x2c7   : > { %3142 = vset.pattern.permute.xlu0 %v3309_v54  ;;  %3143 = vset.pattern.permute.xlu1 %v3309_v54  ;;  %v1977_v22 = vld [vmem:[%s3845_s4] sm:$0xff]  ;;  %v1978_v63 = vld [vmem:[%s3845_s4 + $0x8] sm:$0xff]  ;;  %v1980_v10 = vld [vmem:[%s3845_s4 + $0x18] sm:$0xff] }
 0x2c8   : > { %1944 = vmatprep.mubr.bf16.mxu0 %v3162_v1  ;;  %v1981_v4 = vld [vmem:[%s3845_s4 + $0x20] sm:$0xff]  ;;  %1987 = vperm.xlu0 %3142, %v1977_v22   ;;  %v1982_v57 = vld [vmem:[%s3845_s4 + $0x28] sm:$0xff]  ;;  %v3163_v14 = vld [vmem:[%s3844_s3 + $0x14] ss:$8 sps:$4 sm:$0xff]  }
 0x2c9   : > { %2007 = vperm.xlu1 %3143, %v1981_v4   ;;  %v3172_v62 = vld [vmem:[#allocation6 + $0x38] sm:$0xff]   ;;  %v1984_v41 = vld [vmem:[%s3845_s4 + $0x38] sm:$0xff]  ;;  %v3174_v15 = vld [vmem:[#allocation6 + $0x28] sm:$0xff]  }
 0x2ca   : > { %2933 = vmatprep.subr.bf16.mxu1 %v3172_v62  ;;  %v3160_v28 = vld [vmem:[%s3844_s3] ss:$8 sps:$4 sm:$0xff]   ;;  %v3178_v16 = vld [vmem:[%s3849_s8 + $0x38] sm:$0xff]   ;;  %v1983_v0 = vld [vmem:[%s3845_s4 + $0x30] sm:$0xff] }
 0x2cb   : > { %2934 = vmatpush3.bf16.msra.mxu1 %v3172_v62  ;;  %v3175_v21 = vld [vmem:[#allocation6 + $0x20] sm:$0xff]   ;;  %v3180_v23 = vld [vmem:[%s3849_s8 + $0x30] sm:$0xff]   ;;  %v3176_v24 = vld [vmem:[#allocation6 + $0x18] sm:$0xff]  }
 0x2cc   : > { %v3144_v46 = vld [vmem:[#allocation2 + $0x78] sm:$0xff]   ;;  %v3146_v20 = vld [vmem:[#allocation2 + $0x70] sm:$0xff]   ;;  %v3148_v56 = vld [vmem:[#allocation2 + $0x68] sm:$0xff]   ;;  %1992 = vperm.xlu0 %3142, %v1978_v63   ;;  %2935 = vmatprep.subr.bf16.mxu1 %v3173_v7 }
 0x2cd   : > { %v3145_v53 = vld [vmem:[#allocation2 + $0x38] sm:$0xff]   ;;  %2801 = vmatprep.subr.bf16.mxu0 %v3144_v46  ;;  %v3147_v55 = vld [vmem:[#allocation2 + $0x30] sm:$0xff]   ;;  %v3149_v58 = vld [vmem:[#allocation2 + $0x28] sm:$0xff]   ;;  %2012 = vperm.xlu1 %3143, %v1982_v57  }
 0x2ce   : > { %2802 = vmatpush3.bf16.msra.mxu0 %v3145_v53  ;;  %v3150_v49 = vld [vmem:[#allocation2 + $0x60] sm:$0xff]   ;;  %v3152_v60 = vld [vmem:[#allocation2 + $0x58] sm:$0xff]   ;;  %v3154_v61 = vld [vmem:[#allocation2 + $0x50] sm:$0xff]  }
 0x2cf   : > { %2803 = vmatprep.subr.bf16.mxu0 %v3146_v20  ;;  %v3151_v59 = vld [vmem:[#allocation2 + $0x20] sm:$0xff]   ;;  %v3153_v40 = vld [vmem:[#allocation2 + $0x18] sm:$0xff]   ;;  %v3155_v18 = vld [vmem:[#allocation2 + $0x10] sm:$0xff]   ;;  %2936 = vmatpush3.bf16.msra.mxu1 %v3173_v7 }
 0x2d0   : > { %v3156_v3 = vld [vmem:[#allocation2 + $0x48] sm:$0xff]   ;;  %v3158_v6 = vld [vmem:[#allocation2 + $0x40] sm:$0xff]   ;;  %1997 = vperm.xlu0 %3142, %v1979_v8   ;;  %2937 = vmatprep.subr.bf16.mxu1 %v3174_v15  ;;  %v3165_v27 = vld [vmem:[%s3844_s3 + $0x10] ss:$8 sps:$4 sm:$0xff]  }
 0x2d1   : > { %v3157_v5 = vld [vmem:[#allocation2 + $0x8] sm:$0xff]   ;;  %v3159_v29 = vld [vmem:[#allocation2] sm:$0xff]   ;;  %2002 = vperm.xlu1 %3143, %v1980_v10   ;;  %v3177_v13 = vld [vmem:[#allocation6 + $0x10] sm:$0xff]  }
 0x2d2   : > { %2804 = vmatpush3.bf16.msra.mxu0 %v3147_v55  ;;  %v3182_v25 = vld [vmem:[%s3849_s8 + $0x28] sm:$0xff]   ;;  %v3183_v26 = vld [vmem:[#allocation2] sm:$0xff]   ;;  %v3179_v2 = vld [vmem:[#allocation6 + $0x8] sm:$0xff]  }
 0x2d3   : > { %2805 = vmatprep.subr.bf16.mxu0 %v3148_v56  ;;  %2938 = vmatpush3.bf16.msra.mxu1 %v3174_v15  ;;  %v3166_v30 = vld [vmem:[%s3844_s3 + $0x24] ss:$8 sps:$4 sm:$0xff]   ;;  %v3168_v31 = vld [vmem:[%s3844_s3 + $0x20] ss:$8 sps:$4 sm:$0xff]   ;;  %v3169_v32 = vld [vmem:[%s3844_s3 + $0x34] ss:$8 sps:$4 sm:$0xff]  }
 0x2d4   : > { %2017 = vperm.xlu0 %3142, %v1983_v0   ;;  %2939 = vmatprep.subr.bf16.mxu1 %v3175_v21  ;;  %v3181_v33 = vld [vmem:[#allocation6] sm:$0xff]   ;;  %v3171_v34 = vld [vmem:[%s3844_s3 + $0x30] ss:$8 sps:$4 sm:$0xff]   ;;  %v3185_v38 = vld [vmem:[%s3849_s8 + $0x20] sm:$0xff]  }
 0x2d5   : > { %2022 = vperm.xlu1 %3143, %v1984_v41   ;;  %2949 = vmatprep.mubr.bf16.mxu1 %v3183_v26  ;;  %v3184_v36 = vld [vmem:[#allocation2 + $0x8] sm:$0xff]   ;;  %v3186_v37 = vld [vmem:[%s3849_s8 + $0x18] sm:$0xff]   ;;  %v3187_v39 = vld [vmem:[%s3849_s8 + $0x10] sm:$0xff]  }
 0x2d6   : > { %2806 = vmatpush3.bf16.msra.mxu0 %v3149_v58  ;;  %v3188_v42 = vld [vmem:[%s3849_s8 + $0x8] sm:$0xff]   ;;  %v3189_v43 = vld [vmem:[%s3849_s8] sm:$0xff]   ;;  %v3190_v45 = vld [vmem:[#allocation2 + $0x10] sm:$0xff]  }
 0x2d7   : > { %2807 = vmatprep.subr.bf16.mxu0 %v3150_v49  ;;  %2940 = vmatpush3.bf16.msra.mxu1 %v3175_v21  ;;  %v3191_v9 = vld [vmem:[#allocation2 + $0x18] sm:$0xff]  }
 0x2d8   : > { %2941 = vmatprep.subr.bf16.mxu1 %v3176_v24 }
 0x2da   : > { %2808 = vmatpush3.bf16.msra.mxu0 %v3151_v59 }
 0x2db   : > { %2809 = vmatprep.subr.bf16.mxu0 %v3152_v60  ;;  %2942 = vmatpush3.bf16.msra.mxu1 %v3176_v24 }
 0x2dc   : > { %2943 = vmatprep.subr.bf16.mxu1 %v3177_v13 }
 0x2de   : > { %2810 = vmatpush3.bf16.msra.mxu0 %v3153_v40 }
 0x2df   : > { %2811 = vmatprep.subr.bf16.mxu0 %v3154_v61  ;;  %2944 = vmatpush3.bf16.msra.mxu1 %v3177_v13 }
 0x2e0   : > { %2945 = vmatprep.subr.bf16.mxu1 %v3179_v2 }
 0x2e2   : > { %2812 = vmatpush3.bf16.msra.mxu0 %v3155_v18 }
 0x2e3   : > { %2813 = vmatprep.subr.bf16.mxu0 %v3156_v3  ;;  %2946 = vmatpush3.bf16.msra.mxu1 %v3179_v2 }
 0x2e4   : > { %2947 = vmatprep.subr.bf16.mxu1 %v3181_v33 }
 0x2e6   : > { %2814 = vmatpush3.bf16.msra.mxu0 %v3157_v5 }
 0x2e7   : > { %2815 = vmatprep.subr.bf16.mxu0 %v3158_v6  ;;  %2948 = vmatpush3.bf16.msra.mxu1 %v3181_v33 }
 0x2e8   : > { %2983 = vmatprep.subr.bf16.mxu1 %v3178_v16 }
 0x2ea   : > { %2816 = vmatpush3.bf16.msra.mxu0 %v3159_v29  ;;  %2950 = vmatmul.mubr.bf16.vlgmr.msra.gmra.mxu1 %v3184_v36 }
 0x2eb   : > { %2957 = vmatprep.subr.bf16.mxu0 %v3178_v16  ;;  %2991 = vmatpush3.bf16.msra.mxu1 %v3178_v16 }
 0x2ec   : > { %2984 = vmatprep.subr.bf16.mxu1 %v3180_v23  ;;  %2953 = vmatprep.mubr.bf16.mxu1 %v3190_v45 }
 0x2ed   : > { %1945 = vmatmul.mubr.bf16.vlgmr.msra.gmra.mxu0 %v3160_v28 }
 0x2ee   : > { %1952 = vmatprep.mubr.bf16.mxu0 %v3163_v14  ;;  %2958 = vmatpush3.bf16.msra.mxu0 %v3178_v16 }
 0x2ef   : > { %2959 = vmatprep.subr.bf16.mxu0 %v3180_v23  ;;  %2992 = vmatpush3.bf16.msra.mxu1 %v3180_v23 }
 0x2f0   : > { %2985 = vmatprep.subr.bf16.mxu1 %v3182_v25 }
 0x2f2   : > { %2960 = vmatpush3.bf16.msra.mxu0 %v3180_v23  ;;  %2954 = vmatmul.mubr.bf16.gmra.mxu1 %v3191_v9 }
 0x2f3   : > { %2961 = vmatprep.subr.bf16.mxu0 %v3182_v25  ;;  %2993 = vmatpush3.bf16.msra.mxu1 %v3182_v25 }
 0x2f4   : > { %2986 = vmatprep.subr.bf16.mxu1 %v3185_v38 }
 0x2f5   : > { %1953 = vmatmul.mubr.bf16.gmra.mxu0 %v3165_v27 }
 0x2f6   : > { %1960 = vmatprep.mubr.bf16.mxu0 %v3166_v30  ;;  %2962 = vmatpush3.bf16.msra.mxu0 %v3182_v25  ;;  %v2635_v30 = vld [vmem:[%s3851_s10] ss:$0 sm:$0xff] }
 0x2f7   : > { %2963 = vmatprep.subr.bf16.mxu0 %v3185_v38  ;;  %2994 = vmatpush3.bf16.msra.mxu1 %v3185_v38 }
 0x2f8   : > { %2987 = vmatprep.subr.bf16.mxu1 %v3186_v37 }
 0x2fa   : > { %2964 = vmatpush3.bf16.msra.mxu0 %v3185_v38 }
 0x2fb   : > { %2965 = vmatprep.subr.bf16.mxu0 %v3186_v37  ;;  %2995 = vmatpush3.bf16.msra.mxu1 %v3186_v37 }
 0x2fc   : > { %2988 = vmatprep.subr.bf16.mxu1 %v3187_v39 }
 0x2fd   : > { %1961 = vmatmul.mubr.bf16.gmra.mxu0 %v3168_v31 }
 0x2fe   : > { %1968 = vmatprep.mubr.bf16.mxu0 %v3169_v32  ;;  %2966 = vmatpush3.bf16.msra.mxu0 %v3186_v37 }
 0x2ff   : > { %2967 = vmatprep.subr.bf16.mxu0 %v3187_v39  ;;  %2996 = vmatpush3.bf16.msra.mxu1 %v3187_v39 }
 0x300   : > { %2989 = vmatprep.subr.bf16.mxu1 %v3188_v42 }
 0x302   : > { %2968 = vmatpush3.bf16.msra.mxu0 %v3187_v39 }
 0x303   : > { %2969 = vmatprep.subr.bf16.mxu0 %v3188_v42  ;;  %2997 = vmatpush3.bf16.msra.mxu1 %v3188_v42 }
 0x304   : > { %2990 = vmatprep.subr.bf16.mxu1 %v3189_v43 }
 0x305   : > { %1969 = vmatmul.mubr.bf16.gmra.mxu0 %v3171_v34 }
 0x306   : > { %2970 = vmatpush3.bf16.msra.mxu0 %v3188_v42 }
 0x307   : > { %2971 = vmatprep.subr.bf16.mxu0 %v3189_v43  ;;  %2998 = vmatpush3.bf16.msra.mxu1 %v3189_v43 }
 0x30a   : > { %2972 = vmatpush3.bf16.msra.mxu0 %v3189_v43 }
 0x343   : > { %v1988_v11 = vpop.permute.xlu0 %1987 }
 0x344   : > { %v2008_v48 = vpop.permute.xlu1 %2007 }
 0x347   : > { %v1993_v47 = vpop.permute.xlu0 %1992 }
 0x348   : > { %v2013_v53 = vpop.permute.xlu1 %2012 }
 0x34b   : > { %v1998_v58 = vpop.permute.xlu0 %1997 }
 0x34c   : > { %v2003_v60 = vpop.permute.xlu1 %2002 }
 0x34f   : > { %v2018_v15 = vpop.permute.xlu0 %2017 }
 0x350   : > { %v2023_v41 = vpop.permute.xlu1 %2022 }
 0x3aa   : > { %v2951_v23 = vpop.f32.mrf.mxu1 }
 0x3ac   : > { %v2183_v24 = vpop.f32.mrf.mxu1 }
 0x3ad   : > { %v2817_v35 = vpop.f32.mrf.mxu0 }
 0x3ae   : > { %v2952_v25 = vpop.f32.mrf.mxu1 }
 0x3af   : > { %v2818_v44 = vpop.f32.mrf.mxu0 }
 0x3b0   : > { %v2819_v50 = vadd.f32 %v2818_v44, %v2817_v35  ;;  %v2186_v26 = vpop.f32.mrf.mxu1 }
 0x3b1   : > { %v2820_v17 = vpop.f32.mrf.mxu0 }
 0x3b2   : > { %v2025_v19 = vmul.f32 %v2819_v50, %v1988_v11  ;;  %v2955_v2 = vpop.f32.mrf.mxu1 }
 0x3b3   : > { %v2821_v12 = vpop.f32.mrf.mxu0 }
 0x3b4   : > { %v2822_v51 = vadd.f32 %v2821_v12, %v2820_v17  ;;  %v2199_v39 = vpop.f32.mrf.mxu1 }
 0x3b5   : > { %v2823_v52 = vpop.f32.mrf.mxu0 }
 0x3b6   : > { %v2026_v46 = vmul.f32 %v2822_v51, %v1993_v47  ;;  %v2956_v11 = vpop.f32.mrf.mxu1 }
 0x3b7   : > { %v2824_v54 = vpop.f32.mrf.mxu0 }
 0x3b8   : > { %v2041_v20 = vpack.c.bf16 %v2026_v46, %v2025_v19  ;;  %v2825_v56 = vadd.f32 %v2824_v54, %v2823_v52 }
 0x3b9   : > { %v2826_v55 = vpop.f32.mrf.mxu0 }
 0x3ba   : > { %2973 = vmatprep.mubr.bf16.mxu0 %v2041_v20  ;;  %v2027_v61 = vmul.f32 %v2825_v56, %v1998_v58 }
 0x3bb   : > { %v2827_v49 = vpop.f32.mrf.mxu0 }
 0x3bc   : > { %v2828_v59 = vadd.f32 %v2827_v49, %v2826_v55 }
 0x3bd   : > { %v2829_v40 = vpop.f32.mrf.mxu0 }
 0x3be   : > { %v2028_v1 = vmul.f32 %v2828_v59, %v2003_v60 }
 0x3bf   : > { %v2830_v18 = vpop.f32.mrf.mxu0 }
 0x3c0   : > { %v2042_v3 = vpack.c.bf16 %v2028_v1, %v2027_v61  ;;  %v2831_v4 = vadd.f32 %v2830_v18, %v2829_v40 }
 0x3c1   : > { %v2832_v22 = vpop.f32.mrf.mxu0 }
 0x3c2   : > { %2974 = vmatmul.mubr.bf16.vlgmr.msra.gmra.mxu0 %v2042_v3  ;;  %v2029_v57 = vmul.f32 %v2831_v4, %v2008_v48  ;;  %v2202_v48 = vpop.f32.mrf.mxu1 }
 0x3c3   : > { %v2833_v5 = vpop.f32.mrf.mxu0 }
 0x3c4   : > { %v2834_v6 = vadd.f32 %v2833_v5, %v2832_v22 }
 0x3c5   : > { %v2835_v63 = vpop.f32.mrf.mxu0 }
 0x3c6   : > { %v2030_v62 = vmul.f32 %v2834_v6, %v2013_v53 }
 0x3c7   : > { %v2836_v29 = vpop.f32.mrf.mxu0 }
 0x3c8   : > { %v2043_v7 = vpack.c.bf16 %v2030_v62, %v2029_v57  ;;  %v2837_v10 = vadd.f32 %v2836_v29, %v2835_v63 }
 0x3c9   : > { %v2838_v8 = vpop.f32.mrf.mxu0 }
 0x3ca   : > { %2977 = vmatprep.mubr.bf16.mxu1 %v2043_v7  ;;  %v2031_v16 = vmul.f32 %v2837_v10, %v2018_v15 }
 0x3cb   : > { %v2839_v28 = vpop.f32.mrf.mxu0 }
 0x3cc   : > { %v2840_v14 = vadd.f32 %v2839_v28, %v2838_v8 }
 0x3ce   : > { %v2032_v0 = vmul.f32 %v2840_v14, %v2023_v41 }
 0x3d0   : > { %v2044_v21 = vpack.c.bf16 %v2032_v0, %v2031_v16 }
 0x3d2   : > { %2978 = vmatmul.mubr.bf16.vlgmr.msra.gmra.mxu1 %v2044_v21 }
 0x482   : > { %v2975_v27 = vpop.f32.mrf.mxu0 }
 0x483   : > { %v2305_v13 = vadd.f32 %v2975_v27, %v2951_v23 }
 0x484   : > { %v2296_v31 = vpop.f32.mrf.mxu0 }
 0x485   : > { %v2336_v32 = vadd.f32 %v2635_v30, %v2305_v13  ;;  %v2297_v33 = vadd.f32 %v2296_v31, %v2183_v24 }
 0x486   : > { %v2976_v34 = vpop.f32.mrf.mxu0 }
 0x487   : > { %v2334_v36 = vadd.f32 %v2635_v30, %v2297_v33  ;;  %v2308_v38 = vadd.f32 %v2976_v34, %v2952_v25  ;;  %v2344_v37 = vmul.f32 %v2336_v32, %v2336_v32 }
 0x488   : > { %v2299_v42 = vpop.f32.mrf.mxu0 }
 0x489   : > { %v2300_v43 = vadd.f32 %v2299_v42, %v2186_v26  ;;  %2354 = vadd.xlane.f32.xlu0 %v2344_v37  ;;  %v2337_v45 = vadd.f32 %v2635_v30, %v2308_v38  ;;  %v2342_v35 = vmul.f32 %v2334_v36, %v2334_v36 }
 0x48b   : > { %v2335_v9 = vadd.f32 %v2635_v30, %v2300_v43  ;;  %v2345_v17 = vmul.f32 %v2337_v45, %v2337_v45 }
 0x48d   : > { %2350 = vadd.xlane.f32.xlu0 %v2342_v35  ;;  %v2343_v44 = vmul.f32 %v2335_v9, %v2335_v9 }
 0x48f   : > { %2352 = vadd.xlane.f32.xlu1 %v2343_v44 }
 0x491   : > { %2356 = vadd.xlane.f32.xlu0 %v2345_v17 }
 0x492   : > { %v2979_v50 = vpop.f32.mrf.mxu1 }
 0x493   : > { %v2321_v47 = vadd.f32 %v2979_v50, %v2955_v2 }
 0x494   : > { %v2312_v12 = vpop.f32.mrf.mxu1 }
 0x495   : > { %v2313_v51 = vadd.f32 %v2312_v12, %v2199_v39  ;;  %v2340_v53 = vadd.f32 %v2635_v30, %v2321_v47 }
 0x496   : > { %v2980_v52 = vpop.f32.mrf.mxu1 }
 0x497   : > { %v2338_v19 = vadd.f32 %v2635_v30, %v2313_v51  ;;  %v2324_v54 = vadd.f32 %v2980_v52, %v2956_v11  ;;  %v2348_v49 = vmul.f32 %v2340_v53, %v2340_v53 }
 0x498   : > { %v2315_v46 = vpop.f32.mrf.mxu1 }
 0x499   : > { %v2316_v20 = vadd.f32 %v2315_v46, %v2202_v48  ;;  %v2346_v55 = vmul.f32 %v2338_v19, %v2338_v19  ;;  %v2341_v58 = vadd.f32 %v2635_v30, %v2324_v54 }
 0x49b   : > { %v2339_v56 = vadd.f32 %v2635_v30, %v2316_v20  ;;  %2358 = vadd.xlane.f32.xlu1 %v2346_v55  ;;  %v2349_v60 = vmul.f32 %v2341_v58, %v2341_v58 }
 0x49d   : > { %v2347_v59 = vmul.f32 %v2339_v56, %v2339_v56 }
 0x49f   : > { %2362 = vadd.xlane.f32.xlu1 %v2348_v49  ;;  %2360 = vadd.xlane.f32.xlu0 %v2347_v59 }
 0x4a3   : > { %2364 = vadd.xlane.f32.xlu0 %v2349_v60 }
 0x512   : > { %v2355_v40 = vpop.xlane.xlu0 %2354 }
 0x513   : > { %v2368_v61 = vmax.f32 %v2355_v40, 1e-24 }
 0x515   : > { %3192 = vrsqrt.f32 %v2368_v61 }
 0x516   : > { %v2351_v1 = vpop.xlane.xlu0 %2350 }
 0x517   : > { %v2366_v18 = vmax.f32 %v2351_v1, 1e-24 }
 0x518   : > { %v2353_v3 = vpop.xlane.xlu1 %2352 }
 0x519   : > { %3194 = vrsqrt.f32 %v2366_v18  ;;  %v2367_v22 = vmax.f32 %v2353_v3, 1e-24 }
 0x51a   : > { %v2357_v4 = vpop.xlane.xlu0 %2356 }
 0x51b   : > { %3196 = vrsqrt.f32 %v2367_v22  ;;  %v2369_v5 = vmax.f32 %v2357_v4, 1e-24 }
 0x51d   : > { %3198 = vrsqrt.f32 %v2369_v5 }
 0x522   : > { %v3193_v6 = vpop.eup %3192 }
 0x523   : > { %v2384_v63 = vmul.f32 %v3193_v6, %v2336_v32 }
 0x524   : > { %v2359_v57 = vpop.xlane.xlu1 %2358 }
 0x525   : > { %2392 = vst [vmem:[#allocation8 + $0x10] sm:$0xff] %v2384_v63  ;;  %v2370_v62 = vmax.f32 %v2359_v57, 1e-24 }
 0x526   : > { %v3195_v29 = vpop.eup %3194 }
 0x527   : > { %v2382_v7 = vmul.f32 %v3195_v29, %v2334_v36  ;;  %3200 = vrsqrt.f32 %v2370_v62 }
 0x528   : > { %v3197_v8 = vpop.eup %3196  ;;  %v2363_v10 = vpop.xlane.xlu1 %2362 }
 0x529   : > { %v2361_v28 = vpop.xlane.xlu0 %2360  ;;  %2390 = vst [vmem:[#allocation8] sm:$0xff] %v2382_v7  ;;  %v2383_v14 = vmul.f32 %v3197_v8, %v2335_v9  ;;  %v2372_v41 = vmax.f32 %v2363_v10, 1e-24 }
 0x52a   : > { %v2371_v15 = vmax.f32 %v2361_v28, 1e-24  ;;  %v3199_v16 = vpop.eup %3198 }
 0x52b   : > { %2391 = vst [vmem:[#allocation8 + $0x8] sm:$0xff] %v2383_v14  ;;  %v2385_v0 = vmul.f32 %v3199_v16, %v2337_v45  ;;  %3202 = vrsqrt.f32 %v2372_v41 }
 0x52c   : > { %3204 = vrsqrt.f32 %v2371_v15 }
 0x52d   : > { %v2365_v21 = vpop.xlane.xlu0 %2364  ;;  %2393 = vst [vmem:[#allocation8 + $0x18] sm:$0xff] %v2385_v0 }
 0x52e   : > { %v2373_v23 = vmax.f32 %v2365_v21, 1e-24 }
 0x530   : > { %3206 = vrsqrt.f32 %v2373_v23 }
 0x534   : > { %v3201_v24 = vpop.eup %3200 }
 0x535   : > { %v2386_v25 = vmul.f32 %v3201_v24, %v2338_v19 }
 0x537   : > { %2394 = vst [vmem:[#allocation8 + $0x20] sm:$0xff] %v2386_v25 }
 0x538   : > { %v3203_v26 = vpop.eup %3202 }
 0x539   : > { %v3205_v27 = vpop.eup %3204  ;;  %v2388_v30 = vmul.f32 %v3203_v26, %v2340_v53 }
 0x53a   : > { %v2387_v13 = vmul.f32 %v3205_v27, %v2339_v56 }
 0x53b   : > { %2396 = vst [vmem:[#allocation8 + $0x30] sm:$0xff] %v2388_v30 }
 0x53c   : > { %2395 = vst [vmem:[#allocation8 + $0x28] sm:$0xff] %v2387_v13 }
 0x53d   : > { %v3207_v2 = vpop.eup %3206 }
 0x53e   : > { %v2389_v31 = vmul.f32 %v3207_v2, %v2341_v58 }
 0x540   : > { %2397 = vst [vmem:[#allocation8 + $0x38] sm:$0xff] %v2389_v31 }
 0x541 PF: > { %p3023_p5 = scmp.eq.s32.totalorder %s3379_s18, 1  ;;  %s3310_s15 = smov [#allocation8]  }
 0x542   : > { %s2404_s16 = sshll.u32 %s3310_s15, 4  ;;  %s2405_s16 = int_to_ptr.vmem [resolvable:$true] %s2404_s16 }
 0x543   : > { %s3260_s19 = scalar_lea.vmem %s2405_s16, 1024  ;;  %p3267_p13 = scmp.lt.s32.totalorder %s2405_s16, %s2405_s16 }
 0x544   : > { %p3261_p6 = scmp.ne.s32.totalorder %s2405_s16, %s3260_s19  ;;  %p3268_p0 = scmp.lt.s32.totalorder %s3260_s19, %s3260_s19 }
 0x546   : > { %p3262_p11 = pnand %p3261_p6, %p3023_p5  ;;  %p3269_p1 = por %p3268_p0, %p3267_p13 }
 0x548   : > { %p3263_p12 = pneg %p3262_p11 }
 0x54a   : > { %p3270_p4 = pnand %p3269_p1, %p3263_p12 }
 0x54c   : > { %3273 = shalt.err (!%p3270_p4)
}
 0x54d   : > { %s3311_s20 = smov 128   ;;  %s3312_s21 = smov 8  }
 0x54e   : > { %3009 = dma.vmem_to_hbm [thread:$0]  (%p3023_p5), %s2405_s16, 1024, %s3852_s11, [#allocation5], %s3311_s20, %s3311_s20, %s3312_s21  }
 0x54f   : > { %3297 = dma.done.wait (%p3023_p5), [#allocation5], 1024  }
 0x550   : > { %3299 = vsyncadd (%p3023_p5), [#allocation5], 4294966272 }
 0x551 PF: > { %s24_s17 = sadd.s32 1, %s3302_s17  }
 0x552   : > { %p21_p7 = scmp.ge.s32.totalorder %s24_s17, 4  }
 0x554   :  { %23 = sbr.rel (!%p21_p7) target bundleno = 3 (0x3), region = 109 }
 0x559   :  { %2420 = vsyncpa [#allocation4], 1 }
 0x55a   :  { %2422 = vsyncpa [#allocation4 + $0x1], 1 }
 0x55b   :  { %2423 = vsyncpa [#allocation7], 1 }
 0x55c   :  { %2424 = vsyncpa [#allocation5], 1 }
 0x55d   :  { %2426 = vsyncpa [#allocation5 + $0x1], 1 }

</bundles_post_ra>
